<compile_context>
chip_gen: v6e
topology: v6e:2x2x1
jax: 0.10.0
libtpu: 0.0.40
codegen_flags: <defaults>
</compile_context>

<pallas_src>
import math
from functools import partial

import numpy as np
import jax
import jax.numpy as jnp
from jax import lax
from jax.experimental import pallas as pl
from jax.experimental.pallas import tpu as pltpu


# ----------------------------- config ---------------------------------------
class Config:
    fea_dim = 32
    num_ind_actions = 8
    channel_ratio = 4
    time_delay = (0, 1, 2)
    prob_thd = 0.3
    dist_thd = 1.0


def _round_up(x, m):
    return (x + m - 1) // m * m


# ------------------------- single fused kernel -------------------------------
# Per grid step (one batch):
#   slab  = x @ w_fused + b_fused        one [PW,D]@[D,128] matmul holding
#                                        [proj_b | proj_c | map_real | map_delay | node-mean col | edge-mean col]
#   corr  = exp(bf @ cf^T) * edge_col    [PW,PW] on-chip correlation
#   ec_l  = S (corr*m_l) S^T             lag-diagonal edge costs via masked block-sum matmuls
#   scores -> best lag (strictly-greater, torch semantics) -> conn mask
#   align_fuse via precomputed clamped-shift weights (deterministic 1/k mixing)
#   spatial weights from pos via one small matmul, relation softmax, sym-normalized gconv, ReLU
def fused_asyncgraph_kernel(x_ref, pos_ref, wf_ref, pb_ref, s_ref, m_ref, wt_ref,
                            wqk_ref, bqk_ref, gw_ref, o_ref, *,
                            P, Pp, W, D, R, L, prob_thd, inv_dist_thd, inv_sqrt_d):
    f32 = jnp.float32
    PW = P * W
    Dm = D - R

    x = x_ref[...]                                                    # (PW, D)

    # ---- stage 1: fused lane-dense projection -------------------------------
    slab = jnp.dot(x, wf_ref[...], preferred_element_type=f32) + pb_ref[...]   # (PW, KOUT)
    bmat = slab[:, 0:D]                       # proj_b(x)
    cmat = slab[:, D:2 * D]                   # proj_c(x)
    real = slab[:, 2 * D:2 * D + R]           # map_real(x)
    delay = slab[:, 2 * D + R:3 * D]          # map_delay(x)
    edge_col = slab[:, 3 * D + 1:3 * D + 2]   # mean_A(edge_classifier(proj_a(x)))  (PW, 1)

    S = s_ref[...]                                                    # (Pp, PW) person block indicator
    Smean = S * (1.0 / W)
    means_slab = jnp.dot(Smean, slab, preferred_element_type=f32)     # per-person window means
    real_mean = means_slab[:, 2 * D:2 * D + R]                        # (Pp, R)
    node_mean = means_slab[:, 3 * D:3 * D + 1]                        # (Pp, 1)
    fea_mean = jnp.dot(Smean, x, preferred_element_type=f32)          # (Pp, D) fallback features

    # ---- stage 2: lag-diagonal correlations -> per-lag scores (on-chip) -----
    sim = lax.dot_general(bmat, cmat, (((1,), (1,)), ((), ())),
                          preferred_element_type=f32)                 # (PW, PW)
    # NOTE: exp(dot) matches the reference; assumes moderate correlation magnitudes.
    corr = jnp.exp(sim) * edge_col                                    # row-weighted by edge mean

    row_p = lax.broadcasted_iota(jnp.int32, (Pp, Pp), 0)
    col_p = lax.broadcasted_iota(jnp.int32, (Pp, Pp), 1)
    valid = (row_p < P) & (col_p < P) & (row_p != col_p)
    col_valid = col_p < P

    best_idx = jnp.zeros((Pp, Pp), jnp.int32)
    max_score = jnp.zeros((Pp, Pp), f32)                # torch init: max_score = 0
    for li in range(L):                                 # static unroll over L lags (tiny)
        m = m_ref[li]                                                 # (PW, PW), pre-scaled by 1/nv
        tmp = lax.dot_general(corr * m, S, (((1,), (1,)), ((), ())),
                              preferred_element_type=f32)             # (PW, Pp)
        ec = jnp.dot(S, tmp, preferred_element_type=f32)              # (Pp, Pp) edge cost
        score = 1.0 / (1.0 + jnp.exp(node_mean + ec))                 # sigmoid(-energy)
        take = score > max_score                        # strictly-greater == torch loop tie-break
        best_idx = jnp.where(take, li, best_idx)
        max_score = jnp.where(take, score, max_score)
    conn = jnp.where(valid & (max_score > prob_thd), 1.0, 0.0).astype(f32)   # (Pp, Pp)

    # ---- align_fuse ----------------------------------------------------------
    # TODO(synk): PyTorch mixes connected partners with softmax(torch.randn(k)) weights
    # (non-deterministic per call); replaced with deterministic uniform weights 1/k.
    dlm = jnp.dot(wt_ref[...], delay, preferred_element_type=f32)     # (L*Pp, Dm) per-lag shifted means
    contrib = jnp.zeros((Pp, Dm), f32)
    for li in range(L):
        wgt = conn * (best_idx == li).astype(f32)                     # (Pp, Pp)
        contrib = contrib + jnp.dot(wgt, dlm[li * Pp:(li + 1) * Pp, :],
                                    preferred_element_type=f32)
    cnt = jnp.sum(conn, axis=-1, keepdims=True)                       # (Pp, 1)
    inv_cnt = 1.0 / jnp.maximum(cnt, 1.0)
    fused = jnp.concatenate([real_mean, contrib * inv_cnt], axis=-1)  # (Pp, D)
    aligned = jnp.where(cnt > 0.0, fused, fea_mean)                   # (Pp, D)

    # ---- build_relation ------------------------------------------------------
    pos = pos_ref[...]                                                # (Pp, 2)
    sq = jnp.sum(pos * pos, axis=-1, keepdims=True)                   # (Pp, 1)
    ones = jnp.ones((Pp, 1), f32)
    lhs = jnp.concatenate([pos, sq, ones], axis=-1)                   # (Pp, 4)
    rhs = jnp.concatenate([-2.0 * pos, ones, sq], axis=-1)            # (Pp, 4)
    dist2 = lax.dot_general(lhs, rhs, (((1,), (1,)), ((), ())),
                            preferred_element_type=f32)               # |p_i - p_j|^2 (one small dot)
    spatial = jnp.exp(-jnp.sqrt(jnp.maximum(dist2, 0.0)) * inv_dist_thd)

    qk = jnp.dot(aligned, wqk_ref[...], preferred_element_type=f32) + bqk_ref[...]  # (Pp, 2D)
    q = qk[:, :D]
    k = qk[:, D:2 * D]
    att = lax.dot_general(q, k, (((1,), (1,)), ((), ())),
                          preferred_element_type=f32) * inv_sqrt_d    # (Pp, Pp)
    raw = spatial * jnp.exp(att) * conn                               # zero on diag & padding
    rowsum = jnp.sum(raw, axis=-1, keepdims=True)
    logits = jnp.where(col_valid, raw, -1e30)                         # exclude pad cols from softmax
    mx = jnp.max(logits, axis=-1, keepdims=True)
    ex = jnp.exp(logits - mx)
    sm = ex / jnp.sum(ex, axis=-1, keepdims=True)                     # exact reciprocal (EUP idle)
    rel = jnp.where(rowsum > 0.0, sm, 0.0)                            # rows w/o connections stay 0

    # ---- gconv ---------------------------------------------------------------
    deg = jnp.sum(rel, axis=-1, keepdims=True) + 1e-6
    dinv = lax.rsqrt(deg)
    # (D^-1/2 A D^-1/2) X == dinv * (A @ (dinv * X))   (no in-kernel transpose)
    h = dinv * jnp.dot(rel, dinv * aligned, preferred_element_type=f32)
    o = jnp.dot(h, gw_ref[...], preferred_element_type=f32)
    o_ref[...] = jnp.maximum(o, 0.0)


# ------------------------------ wrapper --------------------------------------
def forward_pallas(fea, pos, p, cfg):
    B, P, W, D = fea.shape
    R = D // cfg.channel_ratio
    L = len(cfg.time_delay)
    PW = P * W
    Pp = _round_up(P, 8)

    # ---- fused projection weights (node/edge heads algebraically folded) ----
    wn_col = jnp.mean(p['wn'], axis=1, keepdims=True)                      # [D,1]
    bn_col = jnp.mean(p['bn']).reshape(1, 1)
    we_col = jnp.mean(p['wa'] @ p['we'], axis=1, keepdims=True)            # [D,1]
    be_col = jnp.mean(p['ba'] @ p['we'] + p['be']).reshape(1, 1)
    w_fused = jnp.concatenate([p['wb'], p['wc'], p['wr'], p['wd'], wn_col, we_col], axis=1)
    b_fused = jnp.concatenate([p['bb'], p['bc'], p['br'], p['bd'], bn_col, be_col], axis=1)
    KO = 3 * D + 2
    KOUT = max(128, _round_up(KO, 128))
    w_fused = jnp.pad(w_fused, ((0, 0), (0, KOUT - KO)))
    b_fused = jnp.pad(b_fused, ((0, 0), (0, KOUT - KO)))

    # ---- static combinatorial constants, hoisted out of the kernel ----------
    wi = np.arange(PW) % W
    blk = np.arange(PW) // W
    S_np = np.zeros((Pp, PW), np.float32)                  # person block-sum indicator
    S_np[blk, np.arange(PW)] = 1.0
    masks_np = np.zeros((L, PW, PW), np.float32)           # lag-diagonal masks, pre-scaled by 1/nv
    for li, lag in enumerate(cfg.time_delay):
        lag = int(lag)
        nv = W - lag
        if nv > 0:
            m = (wi[None, :] == wi[:, None] + lag) & (wi[:, None] < nv)
            masks_np[li] = m.astype(np.float32) / float(nv)
    Wt_np = np.zeros((L * Pp, PW), np.float32)             # clamped-window-shift mean weights
    for li, lag in enumerate(cfg.time_delay):
        lag = int(lag)
        counts = np.zeros((W,), np.float32)
        for v in range(W - 1):
            counts[v] = 1.0 if v >= lag else 0.0
        counts[W - 1] = float(min(lag + 1, W))             # clamp min(w+lag, W-1) hits W-1 lag+1 times
        for pi in range(P):
            Wt_np[li * Pp + pi, pi * W:(pi + 1) * W] = counts / float(W)

    wqk = jnp.concatenate([p['wq'], p['wk']], axis=1)      # one MXU pass for Q and K
    bqk = jnp.concatenate([p['bq'], p['bk']], axis=1)

    x3 = fea.reshape(B, PW, D).astype(jnp.float32)
    pos_p = jnp.pad(pos.astype(jnp.float32), ((0, 0), (0, Pp - P), (0, 0)))

    kern = partial(fused_asyncgraph_kernel, P=P, Pp=Pp, W=W, D=D, R=R, L=L,
                   prob_thd=float(cfg.prob_thd),
                   inv_dist_thd=1.0 / float(cfg.dist_thd),
                   inv_sqrt_d=1.0 / math.sqrt(D))

    out_p = pl.pallas_call(
        kern,
        out_shape=jax.ShapeDtypeStruct((B, Pp, D), jnp.float32),
        grid=(B,),
        in_specs=[
            pl.BlockSpec((None, PW, D), lambda b: (b, 0, 0)),       # fea (per batch)
            pl.BlockSpec((None, Pp, 2), lambda b: (b, 0, 0)),       # pos (per batch)
            pl.BlockSpec((D, KOUT), lambda b: (0, 0)),              # fused projection weight
            pl.BlockSpec((1, KOUT), lambda b: (0, 0)),              # fused projection bias
            pl.BlockSpec((Pp, PW), lambda b: (0, 0)),               # person block-sum matrix
            pl.BlockSpec((L, PW, PW), lambda b: (0, 0, 0)),         # per-lag scaled masks
            pl.BlockSpec((L * Pp, PW), lambda b: (0, 0)),           # per-lag shift-mean weights
            pl.BlockSpec((D, 2 * D), lambda b: (0, 0)),             # [wq | wk]
            pl.BlockSpec((1, 2 * D), lambda b: (0, 0)),             # [bq | bk]
            pl.BlockSpec((D, D), lambda b: (0, 0)),                 # gconv_wt
        ],
        out_specs=pl.BlockSpec((None, Pp, D), lambda b: (b, 0, 0)),
        compiler_params=pltpu.CompilerParams(dimension_semantics=("parallel",)),
    )(x3, pos_p, w_fused, b_fused,
      jnp.asarray(S_np), jnp.asarray(masks_np), jnp.asarray(Wt_np),
      wqk, bqk, p['gw'])
    return out_p[:, :P, :]


# ------------------------ pure-JAX reference (independent) -------------------
def forward_reference(fea, pos, p, cfg):
    f32 = jnp.float32
    B, P, W, D = fea.shape
    R = D // cfg.channel_ratio
    x = fea.reshape(B * P * W, D)
    node_mean = jnp.mean(x @ p['wn'] + p['bn'], -1).reshape(B, P, W).mean(-1)
    a = x @ p['wa'] + p['ba']
    edge_mean = jnp.mean(a @ p['we'] + p['be'], -1).reshape(B, P, W)
    bf = (x @ p['wb'] + p['bb']).reshape(B, P, W, D)
    cf = (x @ p['wc'] + p['bc']).reshape(B, P, W, D)
    real = (x @ p['wr'] + p['br']).reshape(B, P, W, R)
    delay = (x @ p['wd'] + p['bd']).reshape(B, P, W, D - R)

    pd = jnp.einsum('bpwd,bqvd->bpwqv', bf, cf)
    scores = []
    for lag in cfg.time_delay:
        nv = max(W - lag, 0)
        if nv > 0:
            sub = pd[:, :, :nv, :, :]
            idx = jnp.broadcast_to((jnp.arange(nv) + lag)[None, None, :, None, None],
                                   sub.shape[:4] + (1,))
            d_l = jnp.take_along_axis(sub, idx, axis=4)[..., 0]
            edge_cost = (jnp.exp(d_l) * edge_mean[:, :, :nv, None]).sum(axis=2) / nv
        else:
            edge_cost = jnp.zeros((B, P, P), f32)
        scores.append(jax.nn.sigmoid(-(node_mean[:, :, None] + edge_cost)))
    scores = jnp.stack(scores, axis=-1)
    best_idx = jnp.argmax(scores, axis=-1)
    max_score = jnp.max(scores, axis=-1)
    off_diag = ~jnp.eye(P, dtype=bool)[None]
    conn = jnp.where(off_diag, (max_score > cfg.prob_thd).astype(f32), 0.0)
    lags = jnp.asarray(cfg.time_delay, jnp.int32)[best_idx]
    lags = jnp.where(off_diag, lags, 0)

    widx = jnp.minimum(jnp.arange(W)[None, None, None, :] + lags[..., None], W - 1)
    delay_b = jnp.broadcast_to(delay[:, None], (B, P, P, W, D - R))
    delay_g = jnp.take_along_axis(delay_b, widx[..., None], axis=3)
    real_b = jnp.broadcast_to(real[:, :, None], (B, P, P, W, R))
    fused = jnp.concatenate([real_b, delay_g], axis=-1)
    cnt = conn.sum(axis=2)
    wsum = (fused * conn[:, :, :, None, None]).sum(axis=2)
    mixed = jnp.where(cnt[:, :, None, None] > 0,
                      wsum / jnp.maximum(cnt, 1.0)[:, :, None, None], fea)
    aligned = mixed.mean(axis=2)

    diff = pos[:, :, None, :] - pos[:, None, :, :]
    dist = jnp.sqrt(jnp.sum(diff * diff, axis=-1))
    spw = jnp.exp(-dist / cfg.dist_thd)
    q = aligned @ p['wq'] + p['bq']
    k = aligned @ p['wk'] + p['bk']
    sim = jnp.einsum('bpd,bqd->bpq', q, k) / math.sqrt(D)
    raw = spw * jnp.exp(sim) * conn
    rowsum = raw.sum(-1, keepdims=True)
    rel = jnp.where(rowsum > 0, jax.nn.softmax(raw, axis=-1), 0.0)
    deg = rel.sum(-1, keepdims=True) + 1e-6
    dinv = deg ** -0.5
    norm_adj = dinv * rel * jnp.swapaxes(dinv, 1, 2)
    return jax.nn.relu(jnp.einsum('bpq,bqd->bpd', norm_adj, aligned) @ p['gw'])


# ----------------------------- params ---------------------------------------
def init_params(key, cfg):
    D, A = cfg.fea_dim, cfg.num_ind_actions
    R = D // cfg.channel_ratio
    Dm = D - R

    def lin(k, din, dout, scale=0.1):
        kw, kb = jax.random.split(k)
        return (scale * jax.random.normal(kw, (din, dout), jnp.float32),
                scale * jax.random.normal(kb, (1, dout), jnp.float32))

    ks = jax.random.split(key, 10)
    p = {}
    p['wn'], p['bn'] = lin(ks[0], D, A)    # node_classifier
    p['wa'], p['ba'] = lin(ks[1], D, D)    # proj_a
    p['wb'], p['bb'] = lin(ks[2], D, D)    # proj_b
    p['wc'], p['bc'] = lin(ks[3], D, D)    # proj_c
    p['we'], p['be'] = lin(ks[4], D, A)    # edge_classifier
    p['wr'], p['br'] = lin(ks[5], D, R)    # map_real
    p['wd'], p['bd'] = lin(ks[6], D, Dm)   # map_delay
    p['wq'], p['bq'] = lin(ks[7], D, D)    # query_proj
    p['wk'], p['bk'] = lin(ks[8], D, D)    # key_proj
    p['gw'] = jax.random.normal(ks[9], (D, D), jnp.float32)   # gconv_wt ~ randn
    # comb_wt exists in __init__ but is never used in forward; omitted.
    return p


# ----------------------------- main ------------------------------------------
if __name__ == "__main__":
    cfg = Config()
    B, P, W = 2, 3, 8
    key = jax.random.PRNGKey(0)
    kf, kp, kw = jax.random.split(key, 3)
    fea_data = jax.random.normal(kf, (B, P, W, cfg.fea_dim), jnp.float32)
    pos_data = jax.random.normal(kp, (B, P, 2), jnp.float32)
    params = init_params(kw, cfg)

    fwd = jax.jit(lambda f, q: forward_pallas(f, q, params, cfg))
    out = jax.block_until_ready(fwd(fea_data, pos_data))

    ref = jax.block_until_ready(forward_reference(fea_data, pos_data, params, cfg))
    assert out.shape == (B, P, cfg.fea_dim)
    assert bool(jnp.all(jnp.isfinite(out)))
    assert jnp.allclose(out, ref, atol=5e-3, rtol=5e-3), \
        float(jnp.max(jnp.abs(out - ref)))
    print("KERNEL_OK")
</pallas_src>

<mosaic_0001>
module attributes {stable_mosaic.version = 11 : i64} {
  func.func @fused_asyncgraph_kernel(%arg0: i32, %arg1: memref<1x24x32xf32, #tpu.memory_space<vmem>>, %arg2: memref<1x8x2xf32, #tpu.memory_space<vmem>>, %arg3: memref<32x128xf32, #tpu.memory_space<vmem>>, %arg4: memref<1x128xf32, #tpu.memory_space<vmem>>, %arg5: memref<8x24xf32, #tpu.memory_space<vmem>>, %arg6: memref<3x24x24xf32, #tpu.memory_space<vmem>>, %arg7: memref<24x24xf32, #tpu.memory_space<vmem>>, %arg8: memref<32x64xf32, #tpu.memory_space<vmem>>, %arg9: memref<1x64xf32, #tpu.memory_space<vmem>>, %arg10: memref<32x32xf32, #tpu.memory_space<vmem>>, %arg11: memref<1x8x32xf32, #tpu.memory_space<vmem>>) attributes {dimension_semantics = [#tpu.dimension_semantics<parallel>], iteration_bounds = array<i64: 2>, scalar_prefetch = 0 : i64, scratch_operands = 0 : i64, tpu.core_type = #tpu.core_type<tc>, window_params = [{transform_indices = @transform_0, window_bounds = array<i64: 1, 24, 32>}, {transform_indices = @transform_1, window_bounds = array<i64: 1, 8, 2>}, {pipeline_mode = #tpu.pipeline_mode<synchronous>, transform_indices = @transform_2, window_bounds = array<i64: 32, 128>}, {pipeline_mode = #tpu.pipeline_mode<synchronous>, transform_indices = @transform_3, window_bounds = array<i64: 1, 128>}, {pipeline_mode = #tpu.pipeline_mode<synchronous>, transform_indices = @transform_4, window_bounds = array<i64: 8, 24>}, {pipeline_mode = #tpu.pipeline_mode<synchronous>, transform_indices = @transform_5, window_bounds = array<i64: 3, 24, 24>}, {pipeline_mode = #tpu.pipeline_mode<synchronous>, transform_indices = @transform_6, window_bounds = array<i64: 24, 24>}, {pipeline_mode = #tpu.pipeline_mode<synchronous>, transform_indices = @transform_7, window_bounds = array<i64: 32, 64>}, {pipeline_mode = #tpu.pipeline_mode<synchronous>, transform_indices = @transform_8, window_bounds = array<i64: 1, 64>}, {pipeline_mode = #tpu.pipeline_mode<synchronous>, transform_indices = @transform_9, window_bounds = array<i64: 32, 32>}, {transform_indices = @transform_10, window_bounds = array<i64: 1, 8, 32>}]} {
    %c0 = arith.constant 0 : index
    %c0_0 = arith.constant 0 : index
    %c0_1 = arith.constant 0 : index
    %0 = vector.load %arg1[%c0, %c0_0, %c0_1] : memref<1x24x32xf32, #tpu.memory_space<vmem>>, vector<1x24x32xf32>
    %1 = vector.shape_cast %0 : vector<1x24x32xf32> to vector<24x32xf32>
    %c0_2 = arith.constant 0 : index
    %c0_3 = arith.constant 0 : index
    %2 = vector.load %arg3[%c0_2, %c0_3] : memref<32x128xf32, #tpu.memory_space<vmem>>, vector<32x128xf32>
    %cst = arith.constant dense<0.000000e+00> : vector<24x128xf32>
    %3 = tpu.matmul %1, %2, %cst {dimension_numbers = #tpu.dot_dimension_numbers<[1], [0], [0], [1], [0, 0, 1, 1], [], []>} : vector<24x32xf32>, vector<32x128xf32>, vector<24x128xf32> -> vector<24x128xf32>
    %c0_4 = arith.constant 0 : index
    %c0_5 = arith.constant 0 : index
    %4 = vector.load %arg4[%c0_4, %c0_5] : memref<1x128xf32, #tpu.memory_space<vmem>>, vector<1x128xf32>
    %5 = vector.broadcast %4 : vector<1x128xf32> to vector<24x128xf32>
    %6 = arith.addf %3, %5 : vector<24x128xf32>
    %7 = vector.extract_strided_slice %6 {offsets = [0, 0], sizes = [24, 32], strides = [1, 1]} : vector<24x128xf32> to vector<24x32xf32>
    %8 = vector.extract_strided_slice %6 {offsets = [0, 32], sizes = [24, 32], strides = [1, 1]} : vector<24x128xf32> to vector<24x32xf32>
    %9 = vector.extract_strided_slice %6 {offsets = [0, 72], sizes = [24, 24], strides = [1, 1]} : vector<24x128xf32> to vector<24x24xf32>
    %10 = vector.extract_strided_slice %6 {offsets = [0, 97], sizes = [24, 1], strides = [1, 1]} : vector<24x128xf32> to vector<24x1xf32>
    %c0_6 = arith.constant 0 : index
    %c0_7 = arith.constant 0 : index
    %11 = vector.load %arg5[%c0_6, %c0_7] : memref<8x24xf32, #tpu.memory_space<vmem>>, vector<8x24xf32>
    %cst_8 = arith.constant 1.250000e-01 : f32
    %12 = vector.broadcast %cst_8 : f32 to vector<8x24xf32>
    %13 = arith.mulf %11, %12 : vector<8x24xf32>
    %cst_9 = arith.constant dense<0.000000e+00> : vector<8x128xf32>
    %14 = tpu.matmul %13, %6, %cst_9 {dimension_numbers = #tpu.dot_dimension_numbers<[1], [0], [0], [1], [0, 0, 1, 1], [], []>} : vector<8x24xf32>, vector<24x128xf32>, vector<8x128xf32> -> vector<8x128xf32>
    %15 = vector.extract_strided_slice %14 {offsets = [0, 64], sizes = [8, 8], strides = [1, 1]} : vector<8x128xf32> to vector<8x8xf32>
    %16 = vector.extract_strided_slice %14 {offsets = [0, 96], sizes = [8, 1], strides = [1, 1]} : vector<8x128xf32> to vector<8x1xf32>
    %cst_10 = arith.constant dense<0.000000e+00> : vector<8x32xf32>
    %17 = tpu.matmul %13, %1, %cst_10 {dimension_numbers = #tpu.dot_dimension_numbers<[1], [0], [0], [1], [0, 0, 1, 1], [], []>} : vector<8x24xf32>, vector<24x32xf32>, vector<8x32xf32> -> vector<8x32xf32>
    %cst_11 = arith.constant dense<0.000000e+00> : vector<24x24xf32>
    %18 = tpu.matmul %7, %8, %cst_11 {dimension_numbers = #tpu.dot_dimension_numbers<[1], [1], [0], [0], [0, 0, 1, 0], [], []>} : vector<24x32xf32>, vector<24x32xf32>, vector<24x24xf32> -> vector<24x24xf32>
    %19 = math.exp %18 : vector<24x24xf32>
    %20 = vector.broadcast %10 : vector<24x1xf32> to vector<24x24xf32>
    %21 = arith.mulf %19, %20 : vector<24x24xf32>
    %22 = tpu.iota {dimensions = array<i32: 0>} : vector<8x8xi32>
    %23 = tpu.iota {dimensions = array<i32: 1>} : vector<8x8xi32>
    %c3_i32 = arith.constant 3 : i32
    %24 = vector.broadcast %c3_i32 : i32 to vector<8x8xi32>
    %25 = arith.cmpi slt, %22, %24 : vector<8x8xi32>
    %c3_i32_12 = arith.constant 3 : i32
    %26 = vector.broadcast %c3_i32_12 : i32 to vector<8x8xi32>
    %27 = arith.cmpi slt, %23, %26 : vector<8x8xi32>
    %28 = arith.andi %25, %27 : vector<8x8xi1>
    %29 = arith.cmpi ne, %22, %23 : vector<8x8xi32>
    %30 = arith.andi %28, %29 : vector<8x8xi1>
    %c3_i32_13 = arith.constant 3 : i32
    %31 = vector.broadcast %c3_i32_13 : i32 to vector<8x8xi32>
    %32 = arith.cmpi slt, %23, %31 : vector<8x8xi32>
    %c0_i32 = arith.constant 0 : i32
    %33 = vector.broadcast %c0_i32 : i32 to vector<8x8xi32>
    %cst_14 = arith.constant 0.000000e+00 : f32
    %34 = vector.broadcast %cst_14 : f32 to vector<8x8xf32>
    %c0_15 = arith.constant 0 : index
    %c0_16 = arith.constant 0 : index
    %c0_17 = arith.constant 0 : index
    %35 = vector.load %arg6[%c0_15, %c0_16, %c0_17] : memref<3x24x24xf32, #tpu.memory_space<vmem>>, vector<1x24x24xf32>
    %36 = vector.shape_cast %35 : vector<1x24x24xf32> to vector<24x24xf32>
    %37 = arith.mulf %21, %36 : vector<24x24xf32>
    %cst_18 = arith.constant dense<0.000000e+00> : vector<24x8xf32>
    %38 = tpu.matmul %37, %11, %cst_18 {dimension_numbers = #tpu.dot_dimension_numbers<[1], [1], [0], [0], [0, 0, 1, 0], [], []>} : vector<24x24xf32>, vector<8x24xf32>, vector<24x8xf32> -> vector<24x8xf32>
    %cst_19 = arith.constant dense<0.000000e+00> : vector<8x8xf32>
    %39 = tpu.matmul %11, %38, %cst_19 {dimension_numbers = #tpu.dot_dimension_numbers<[1], [0], [0], [1], [0, 0, 1, 1], [], []>} : vector<8x24xf32>, vector<24x8xf32>, vector<8x8xf32> -> vector<8x8xf32>
    %40 = vector.broadcast %16 : vector<8x1xf32> to vector<8x8xf32>
    %41 = arith.addf %40, %39 : vector<8x8xf32>
    %42 = math.exp %41 : vector<8x8xf32>
    %cst_20 = arith.constant 1.000000e+00 : f32
    %43 = vector.broadcast %cst_20 : f32 to vector<8x8xf32>
    %44 = arith.addf %43, %42 : vector<8x8xf32>
    %cst_21 = arith.constant 1.000000e+00 : f32
    %45 = vector.broadcast %cst_21 : f32 to vector<8x8xf32>
    %46 = arith.divf %45, %44 : vector<8x8xf32>
    %47 = arith.cmpf ogt, %46, %34 : vector<8x8xf32>
    %c0_i32_22 = arith.constant 0 : i32
    %48 = vector.broadcast %c0_i32_22 : i32 to vector<8x8xi32>
    %49 = arith.select %47, %48, %33 : vector<8x8xi1>, vector<8x8xi32>
    %50 = arith.select %47, %46, %34 : vector<8x8xi1>, vector<8x8xf32>
    %c1 = arith.constant 1 : index
    %c0_23 = arith.constant 0 : index
    %c0_24 = arith.constant 0 : index
    %51 = vector.load %arg6[%c1, %c0_23, %c0_24] : memref<3x24x24xf32, #tpu.memory_space<vmem>>, vector<1x24x24xf32>
    %52 = vector.shape_cast %51 : vector<1x24x24xf32> to vector<24x24xf32>
    %53 = arith.mulf %21, %52 : vector<24x24xf32>
    %cst_25 = arith.constant dense<0.000000e+00> : vector<24x8xf32>
    %54 = tpu.matmul %53, %11, %cst_25 {dimension_numbers = #tpu.dot_dimension_numbers<[1], [1], [0], [0], [0, 0, 1, 0], [], []>} : vector<24x24xf32>, vector<8x24xf32>, vector<24x8xf32> -> vector<24x8xf32>
    %cst_26 = arith.constant dense<0.000000e+00> : vector<8x8xf32>
    %55 = tpu.matmul %11, %54, %cst_26 {dimension_numbers = #tpu.dot_dimension_numbers<[1], [0], [0], [1], [0, 0, 1, 1], [], []>} : vector<8x24xf32>, vector<24x8xf32>, vector<8x8xf32> -> vector<8x8xf32>
    %56 = vector.broadcast %16 : vector<8x1xf32> to vector<8x8xf32>
    %57 = arith.addf %56, %55 : vector<8x8xf32>
    %58 = math.exp %57 : vector<8x8xf32>
    %cst_27 = arith.constant 1.000000e+00 : f32
    %59 = vector.broadcast %cst_27 : f32 to vector<8x8xf32>
    %60 = arith.addf %59, %58 : vector<8x8xf32>
    %cst_28 = arith.constant 1.000000e+00 : f32
    %61 = vector.broadcast %cst_28 : f32 to vector<8x8xf32>
    %62 = arith.divf %61, %60 : vector<8x8xf32>
    %63 = arith.cmpf ogt, %62, %50 : vector<8x8xf32>
    %c1_i32 = arith.constant 1 : i32
    %64 = vector.broadcast %c1_i32 : i32 to vector<8x8xi32>
    %65 = arith.select %63, %64, %49 : vector<8x8xi1>, vector<8x8xi32>
    %66 = arith.select %63, %62, %50 : vector<8x8xi1>, vector<8x8xf32>
    %c2 = arith.constant 2 : index
    %c0_29 = arith.constant 0 : index
    %c0_30 = arith.constant 0 : index
    %67 = vector.load %arg6[%c2, %c0_29, %c0_30] : memref<3x24x24xf32, #tpu.memory_space<vmem>>, vector<1x24x24xf32>
    %68 = vector.shape_cast %67 : vector<1x24x24xf32> to vector<24x24xf32>
    %69 = arith.mulf %21, %68 : vector<24x24xf32>
    %cst_31 = arith.constant dense<0.000000e+00> : vector<24x8xf32>
    %70 = tpu.matmul %69, %11, %cst_31 {dimension_numbers = #tpu.dot_dimension_numbers<[1], [1], [0], [0], [0, 0, 1, 0], [], []>} : vector<24x24xf32>, vector<8x24xf32>, vector<24x8xf32> -> vector<24x8xf32>
    %cst_32 = arith.constant dense<0.000000e+00> : vector<8x8xf32>
    %71 = tpu.matmul %11, %70, %cst_32 {dimension_numbers = #tpu.dot_dimension_numbers<[1], [0], [0], [1], [0, 0, 1, 1], [], []>} : vector<8x24xf32>, vector<24x8xf32>, vector<8x8xf32> -> vector<8x8xf32>
    %72 = vector.broadcast %16 : vector<8x1xf32> to vector<8x8xf32>
    %73 = arith.addf %72, %71 : vector<8x8xf32>
    %74 = math.exp %73 : vector<8x8xf32>
    %cst_33 = arith.constant 1.000000e+00 : f32
    %75 = vector.broadcast %cst_33 : f32 to vector<8x8xf32>
    %76 = arith.addf %75, %74 : vector<8x8xf32>
    %cst_34 = arith.constant 1.000000e+00 : f32
    %77 = vector.broadcast %cst_34 : f32 to vector<8x8xf32>
    %78 = arith.divf %77, %76 : vector<8x8xf32>
    %79 = arith.cmpf ogt, %78, %66 : vector<8x8xf32>
    %c2_i32 = arith.constant 2 : i32
    %80 = vector.broadcast %c2_i32 : i32 to vector<8x8xi32>
    %81 = arith.select %79, %80, %65 : vector<8x8xi1>, vector<8x8xi32>
    %82 = arith.select %79, %78, %66 : vector<8x8xi1>, vector<8x8xf32>
    %cst_35 = arith.constant 3.000000e-01 : f32
    %83 = vector.broadcast %cst_35 : f32 to vector<8x8xf32>
    %84 = arith.cmpf ogt, %82, %83 : vector<8x8xf32>
    %85 = arith.andi %30, %84 : vector<8x8xi1>
    %cst_36 = arith.constant 1.000000e+00 : f32
    %cst_37 = arith.constant 0.000000e+00 : f32
    %86 = vector.broadcast %cst_36 : f32 to vector<8x8xf32>
    %87 = vector.broadcast %cst_37 : f32 to vector<8x8xf32>
    %88 = arith.select %85, %86, %87 : vector<8x8xi1>, vector<8x8xf32>
    %c0_38 = arith.constant 0 : index
    %c0_39 = arith.constant 0 : index
    %89 = vector.load %arg7[%c0_38, %c0_39] : memref<24x24xf32, #tpu.memory_space<vmem>>, vector<24x24xf32>
    %cst_40 = arith.constant dense<0.000000e+00> : vector<24x24xf32>
    %90 = tpu.matmul %89, %9, %cst_40 {dimension_numbers = #tpu.dot_dimension_numbers<[1], [0], [0], [1], [0, 0, 1, 1], [], []>} : vector<24x24xf32>, vector<24x24xf32>, vector<24x24xf32> -> vector<24x24xf32>
    %cst_41 = arith.constant 0.000000e+00 : f32
    %91 = vector.broadcast %cst_41 : f32 to vector<8x24xf32>
    %c0_i32_42 = arith.constant 0 : i32
    %92 = vector.broadcast %c0_i32_42 : i32 to vector<8x8xi32>
    %93 = arith.cmpi eq, %81, %92 : vector<8x8xi32>
    %94 = arith.extui %93 : vector<8x8xi1> to vector<8x8xi32>
    %95 = arith.sitofp %94 : vector<8x8xi32> to vector<8x8xf32>
    %96 = arith.mulf %88, %95 : vector<8x8xf32>
    %97 = vector.extract_strided_slice %90 {offsets = [0, 0], sizes = [8, 24], strides = [1, 1]} : vector<24x24xf32> to vector<8x24xf32>
    %cst_43 = arith.constant dense<0.000000e+00> : vector<8x24xf32>
    %98 = tpu.matmul %96, %97, %cst_43 {dimension_numbers = #tpu.dot_dimension_numbers<[1], [0], [0], [1], [0, 0, 1, 1], [], []>} : vector<8x8xf32>, vector<8x24xf32>, vector<8x24xf32> -> vector<8x24xf32>
    %99 = arith.addf %91, %98 : vector<8x24xf32>
    %c1_i32_44 = arith.constant 1 : i32
    %100 = vector.broadcast %c1_i32_44 : i32 to vector<8x8xi32>
    %101 = arith.cmpi eq, %81, %100 : vector<8x8xi32>
    %102 = arith.extui %101 : vector<8x8xi1> to vector<8x8xi32>
    %103 = arith.sitofp %102 : vector<8x8xi32> to vector<8x8xf32>
    %104 = arith.mulf %88, %103 : vector<8x8xf32>
    %105 = vector.extract_strided_slice %90 {offsets = [8, 0], sizes = [8, 24], strides = [1, 1]} : vector<24x24xf32> to vector<8x24xf32>
    %cst_45 = arith.constant dense<0.000000e+00> : vector<8x24xf32>
    %106 = tpu.matmul %104, %105, %cst_45 {dimension_numbers = #tpu.dot_dimension_numbers<[1], [0], [0], [1], [0, 0, 1, 1], [], []>} : vector<8x8xf32>, vector<8x24xf32>, vector<8x24xf32> -> vector<8x24xf32>
    %107 = arith.addf %99, %106 : vector<8x24xf32>
    %c2_i32_46 = arith.constant 2 : i32
    %108 = vector.broadcast %c2_i32_46 : i32 to vector<8x8xi32>
    %109 = arith.cmpi eq, %81, %108 : vector<8x8xi32>
    %110 = arith.extui %109 : vector<8x8xi1> to vector<8x8xi32>
    %111 = arith.sitofp %110 : vector<8x8xi32> to vector<8x8xf32>
    %112 = arith.mulf %88, %111 : vector<8x8xf32>
    %113 = vector.extract_strided_slice %90 {offsets = [16, 0], sizes = [8, 24], strides = [1, 1]} : vector<24x24xf32> to vector<8x24xf32>
    %cst_47 = arith.constant dense<0.000000e+00> : vector<8x24xf32>
    %114 = tpu.matmul %112, %113, %cst_47 {dimension_numbers = #tpu.dot_dimension_numbers<[1], [0], [0], [1], [0, 0, 1, 1], [], []>} : vector<8x8xf32>, vector<8x24xf32>, vector<8x24xf32> -> vector<8x24xf32>
    %115 = arith.addf %107, %114 : vector<8x24xf32>
    %cst_48 = arith.constant dense<0.000000e+00> : vector<8xf32>
    %116 = vector.multi_reduction <add>, %88, %cst_48 [1] : vector<8x8xf32> to vector<8xf32>
    %117 = vector.shape_cast %116 : vector<8xf32> to vector<8x1xf32>
    %cst_49 = arith.constant 1.000000e+00 : f32
    %118 = vector.broadcast %cst_49 : f32 to vector<8x1xf32>
    %119 = arith.maximumf %117, %118 : vector<8x1xf32>
    %cst_50 = arith.constant 1.000000e+00 : f32
    %120 = vector.broadcast %cst_50 : f32 to vector<8x1xf32>
    %121 = arith.divf %120, %119 : vector<8x1xf32>
    %122 = vector.broadcast %121 : vector<8x1xf32> to vector<8x24xf32>
    %123 = arith.mulf %115, %122 : vector<8x24xf32>
    %124 = tpu.concatenate %15, %123 in 1 : vector<8x8xf32>, vector<8x24xf32> -> vector<8x32xf32>
    %cst_51 = arith.constant 0.000000e+00 : f32
    %125 = vector.broadcast %cst_51 : f32 to vector<8x1xf32>
    %126 = arith.cmpf ogt, %117, %125 : vector<8x1xf32>
    %127 = vector.shape_cast %126 : vector<8x1xi1> to vector<8x1xi1>
    %128 = vector.broadcast %127 : vector<8x1xi1> to vector<8x32xi1>
    %129 = arith.select %128, %124, %17 : vector<8x32xi1>, vector<8x32xf32>
    %c0_52 = arith.constant 0 : index
    %c0_53 = arith.constant 0 : index
    %c0_54 = arith.constant 0 : index
    %130 = vector.load %arg2[%c0_52, %c0_53, %c0_54] : memref<1x8x2xf32, #tpu.memory_space<vmem>>, vector<1x8x2xf32>
    %131 = vector.shape_cast %130 : vector<1x8x2xf32> to vector<8x2xf32>
    %132 = arith.mulf %131, %131 : vector<8x2xf32>
    %cst_55 = arith.constant dense<0.000000e+00> : vector<8xf32>
    %133 = vector.multi_reduction <add>, %132, %cst_55 [1] : vector<8x2xf32> to vector<8xf32>
    %134 = vector.shape_cast %133 : vector<8xf32> to vector<8x1xf32>
    %cst_56 = arith.constant 1.000000e+00 : f32
    %135 = vector.broadcast %cst_56 : f32 to vector<8x1xf32>
    %136 = tpu.concatenate %131, %134, %135 in 1 : vector<8x2xf32>, vector<8x1xf32>, vector<8x1xf32> -> vector<8x4xf32>
    %cst_57 = arith.constant -2.000000e+00 : f32
    %137 = vector.broadcast %cst_57 : f32 to vector<8x2xf32>
    %138 = arith.mulf %137, %131 : vector<8x2xf32>
    %139 = tpu.concatenate %138, %135, %134 in 1 : vector<8x2xf32>, vector<8x1xf32>, vector<8x1xf32> -> vector<8x4xf32>
    %cst_58 = arith.constant dense<0.000000e+00> : vector<8x8xf32>
    %140 = tpu.matmul %136, %139, %cst_58 {dimension_numbers = #tpu.dot_dimension_numbers<[1], [1], [0], [0], [0, 0, 1, 0], [], []>} : vector<8x4xf32>, vector<8x4xf32>, vector<8x8xf32> -> vector<8x8xf32>
    %cst_59 = arith.constant 0.000000e+00 : f32
    %141 = vector.broadcast %cst_59 : f32 to vector<8x8xf32>
    %142 = arith.maximumf %140, %141 : vector<8x8xf32>
    %143 = math.sqrt %142 : vector<8x8xf32>
    %cst_60 = arith.constant 0.000000e+00 : f32
    %144 = vector.broadcast %cst_60 : f32 to vector<8x8xf32>
    %145 = arith.subf %144, %143 : vector<8x8xf32>
    %cst_61 = arith.constant 1.000000e+00 : f32
    %146 = vector.broadcast %cst_61 : f32 to vector<8x8xf32>
    %147 = arith.mulf %145, %146 : vector<8x8xf32>
    %148 = math.exp %147 : vector<8x8xf32>
    %c0_62 = arith.constant 0 : index
    %c0_63 = arith.constant 0 : index
    %149 = vector.load %arg8[%c0_62, %c0_63] : memref<32x64xf32, #tpu.memory_space<vmem>>, vector<32x64xf32>
    %cst_64 = arith.constant dense<0.000000e+00> : vector<8x64xf32>
    %150 = tpu.matmul %129, %149, %cst_64 {dimension_numbers = #tpu.dot_dimension_numbers<[1], [0], [0], [1], [0, 0, 1, 1], [], []>} : vector<8x32xf32>, vector<32x64xf32>, vector<8x64xf32> -> vector<8x64xf32>
    %c0_65 = arith.constant 0 : index
    %c0_66 = arith.constant 0 : index
    %151 = vector.load %arg9[%c0_65, %c0_66] : memref<1x64xf32, #tpu.memory_space<vmem>>, vector<1x64xf32>
    %152 = vector.broadcast %151 : vector<1x64xf32> to vector<8x64xf32>
    %153 = arith.addf %150, %152 : vector<8x64xf32>
    %154 = vector.extract_strided_slice %153 {offsets = [0, 0], sizes = [8, 32], strides = [1, 1]} : vector<8x64xf32> to vector<8x32xf32>
    %155 = vector.extract_strided_slice %153 {offsets = [0, 32], sizes = [8, 32], strides = [1, 1]} : vector<8x64xf32> to vector<8x32xf32>
    %cst_67 = arith.constant dense<0.000000e+00> : vector<8x8xf32>
    %156 = tpu.matmul %154, %155, %cst_67 {dimension_numbers = #tpu.dot_dimension_numbers<[1], [1], [0], [0], [0, 0, 1, 0], [], []>} : vector<8x32xf32>, vector<8x32xf32>, vector<8x8xf32> -> vector<8x8xf32>
    %cst_68 = arith.constant 0.176776692 : f32
    %157 = vector.broadcast %cst_68 : f32 to vector<8x8xf32>
    %158 = arith.mulf %156, %157 : vector<8x8xf32>
    %159 = math.exp %158 : vector<8x8xf32>
    %160 = arith.mulf %148, %159 : vector<8x8xf32>
    %161 = arith.mulf %160, %88 : vector<8x8xf32>
    %cst_69 = arith.constant dense<0.000000e+00> : vector<8xf32>
    %162 = vector.multi_reduction <add>, %161, %cst_69 [1] : vector<8x8xf32> to vector<8xf32>
    %163 = vector.shape_cast %162 : vector<8xf32> to vector<8x1xf32>
    %cst_70 = arith.constant -1.000000e+30 : f32
    %164 = vector.broadcast %cst_70 : f32 to vector<8x8xf32>
    %165 = arith.select %32, %161, %164 : vector<8x8xi1>, vector<8x8xf32>
    %cst_71 = arith.constant dense<0xFF800000> : vector<8xf32>
    %166 = vector.multi_reduction <maximumf>, %165, %cst_71 [1] : vector<8x8xf32> to vector<8xf32>
    %167 = vector.shape_cast %166 : vector<8xf32> to vector<8x1xf32>
    %168 = vector.broadcast %167 : vector<8x1xf32> to vector<8x8xf32>
    %169 = arith.subf %165, %168 : vector<8x8xf32>
    %170 = math.exp %169 : vector<8x8xf32>
    %cst_72 = arith.constant dense<0.000000e+00> : vector<8xf32>
    %171 = vector.multi_reduction <add>, %170, %cst_72 [1] : vector<8x8xf32> to vector<8xf32>
    %172 = vector.shape_cast %171 : vector<8xf32> to vector<8x1xf32>
    %173 = vector.broadcast %172 : vector<8x1xf32> to vector<8x8xf32>
    %174 = arith.divf %170, %173 : vector<8x8xf32>
    %cst_73 = arith.constant 0.000000e+00 : f32
    %175 = vector.broadcast %cst_73 : f32 to vector<8x1xf32>
    %176 = arith.cmpf ogt, %163, %175 : vector<8x1xf32>
    %cst_74 = arith.constant 0.000000e+00 : f32
    %177 = vector.shape_cast %176 : vector<8x1xi1> to vector<8x1xi1>
    %178 = vector.broadcast %177 : vector<8x1xi1> to vector<8x8xi1>
    %179 = vector.broadcast %cst_74 : f32 to vector<8x8xf32>
    %180 = arith.select %178, %174, %179 : vector<8x8xi1>, vector<8x8xf32>
    %cst_75 = arith.constant dense<0.000000e+00> : vector<8xf32>
    %181 = vector.multi_reduction <add>, %180, %cst_75 [1] : vector<8x8xf32> to vector<8xf32>
    %182 = vector.shape_cast %181 : vector<8xf32> to vector<8x1xf32>
    %cst_76 = arith.constant 9.99999997E-7 : f32
    %183 = vector.broadcast %cst_76 : f32 to vector<8x1xf32>
    %184 = arith.addf %182, %183 : vector<8x1xf32>
    %185 = math.rsqrt %184 : vector<8x1xf32>
    %186 = vector.broadcast %185 : vector<8x1xf32> to vector<8x32xf32>
    %187 = arith.mulf %186, %129 : vector<8x32xf32>
    %cst_77 = arith.constant dense<0.000000e+00> : vector<8x32xf32>
    %188 = tpu.matmul %180, %187, %cst_77 {dimension_numbers = #tpu.dot_dimension_numbers<[1], [0], [0], [1], [0, 0, 1, 1], [], []>} : vector<8x8xf32>, vector<8x32xf32>, vector<8x32xf32> -> vector<8x32xf32>
    %189 = vector.broadcast %185 : vector<8x1xf32> to vector<8x32xf32>
    %190 = arith.mulf %189, %188 : vector<8x32xf32>
    %c0_78 = arith.constant 0 : index
    %c0_79 = arith.constant 0 : index
    %191 = vector.load %arg10[%c0_78, %c0_79] : memref<32x32xf32, #tpu.memory_space<vmem>>, vector<32x32xf32>
    %cst_80 = arith.constant dense<0.000000e+00> : vector<8x32xf32>
    %192 = tpu.matmul %190, %191, %cst_80 {dimension_numbers = #tpu.dot_dimension_numbers<[1], [0], [0], [1], [0, 0, 1, 1], [], []>} : vector<8x32xf32>, vector<32x32xf32>, vector<8x32xf32> -> vector<8x32xf32>
    %cst_81 = arith.constant 0.000000e+00 : f32
    %193 = vector.broadcast %cst_81 : f32 to vector<8x32xf32>
    %194 = arith.maximumf %192, %193 : vector<8x32xf32>
    %c0_82 = arith.constant 0 : index
    %c0_83 = arith.constant 0 : index
    %c0_84 = arith.constant 0 : index
    %195 = vector.load %arg11[%c0_82, %c0_83, %c0_84] : memref<1x8x32xf32, #tpu.memory_space<vmem>>, vector<1x8x32xf32>
    %196 = vector.shape_cast %195 : vector<1x8x32xf32> to vector<8x32xf32>
    %197 = vector.shape_cast %194 : vector<8x32xf32> to vector<1x8x32xf32>
    tpu.vector_store %arg11[%c0_82, %c0_83, %c0_84], %197 {strides = array<i32>} : memref<1x8x32xf32, #tpu.memory_space<vmem>>, vector<1x8x32xf32>,
    return
  }
  func.func @transform_0(%arg0: i32) -> (i32, i32, i32) {
    %c0_i32 = arith.constant 0 : i32
    %c0_i32_0 = arith.constant 0 : i32
    %c0_i32_1 = arith.constant 0 : i32
    return %arg0, %c0_i32, %c0_i32_0 : i32, i32, i32
  }
  func.func @transform_1(%arg0: i32) -> (i32, i32, i32) {
    %c0_i32 = arith.constant 0 : i32
    %c0_i32_0 = arith.constant 0 : i32
    %c0_i32_1 = arith.constant 0 : i32
    return %arg0, %c0_i32, %c0_i32_0 : i32, i32, i32
  }
  func.func @transform_2(%arg0: i32) -> (i32, i32) {
    %c0_i32 = arith.constant 0 : i32
    %c0_i32_0 = arith.constant 0 : i32
    %c0_i32_1 = arith.constant 0 : i32
    return %c0_i32, %c0_i32_0 : i32, i32
  }
  func.func @transform_3(%arg0: i32) -> (i32, i32) {
    %c0_i32 = arith.constant 0 : i32
    %c0_i32_0 = arith.constant 0 : i32
    %c0_i32_1 = arith.constant 0 : i32
    return %c0_i32, %c0_i32_0 : i32, i32
  }
  func.func @transform_4(%arg0: i32) -> (i32, i32) {
    %c0_i32 = arith.constant 0 : i32
    %c0_i32_0 = arith.constant 0 : i32
    %c0_i32_1 = arith.constant 0 : i32
    return %c0_i32, %c0_i32_0 : i32, i32
  }
  func.func @transform_5(%arg0: i32) -> (i32, i32, i32) {
    %c0_i32 = arith.constant 0 : i32
    %c0_i32_0 = arith.constant 0 : i32
    %c0_i32_1 = arith.constant 0 : i32
    %c0_i32_2 = arith.constant 0 : i32
    return %c0_i32, %c0_i32_0, %c0_i32_1 : i32, i32, i32
  }
  func.func @transform_6(%arg0: i32) -> (i32, i32) {
    %c0_i32 = arith.constant 0 : i32
    %c0_i32_0 = arith.constant 0 : i32
    %c0_i32_1 = arith.constant 0 : i32
    return %c0_i32, %c0_i32_0 : i32, i32
  }
  func.func @transform_7(%arg0: i32) -> (i32, i32) {
    %c0_i32 = arith.constant 0 : i32
    %c0_i32_0 = arith.constant 0 : i32
    %c0_i32_1 = arith.constant 0 : i32
    return %c0_i32, %c0_i32_0 : i32, i32
  }
  func.func @transform_8(%arg0: i32) -> (i32, i32) {
    %c0_i32 = arith.constant 0 : i32
    %c0_i32_0 = arith.constant 0 : i32
    %c0_i32_1 = arith.constant 0 : i32
    return %c0_i32, %c0_i32_0 : i32, i32
  }
  func.func @transform_9(%arg0: i32) -> (i32, i32) {
    %c0_i32 = arith.constant 0 : i32
    %c0_i32_0 = arith.constant 0 : i32
    %c0_i32_1 = arith.constant 0 : i32
    return %c0_i32, %c0_i32_0 : i32, i32
  }
  func.func @transform_10(%arg0: i32) -> (i32, i32, i32) {
    %c0_i32 = arith.constant 0 : i32
    %c0_i32_0 = arith.constant 0 : i32
    %c0_i32_1 = arith.constant 0 : i32
    return %arg0, %c0_i32, %c0_i32_0 : i32, i32, i32
  }
}

</mosaic_0001>

<bundles_post_ra>
// kernel: _lambda_.1
= control target key start
LH: loop header
LB: loop body
LE: loop exit
PB: predicated region body
PF: predicated region fallthrough
CT: control target
= control target key end

     0   :  { %15 = vsyncpa [#allocation3], 0  ;;  %s3364_s0 = inlined_call_operand.hbm [shape: f32[2,24,32], index: 0, kind: input, shape index: {}]   ;;  %s3365_s1 = inlined_call_operand.vmem [shape: f32[2,8,2], index: 1, kind: input, shape index: {}]   ;;  %s3366_s2 = inlined_call_operand.vmem [shape: f32[32,128], index: 2, kind: input, shape index: {}]   ;;  %s3367_s3 = inlined_call_operand.vmem [shape: f32[1,128], index: 3, kind: input, shape index: {}]   ;;  %s3368_s4 = inlined_call_operand.vmem [shape: f32[8,24], index: 4, kind: input, shape index: {}]   ;;  %s3369_s5 = inlined_call_operand.hbm [shape: f32[3,24,24], index: 5, kind: input, shape index: {}]   ;;  %s3370_s6 = inlined_call_operand.hbm [shape: f32[24,24], index: 6, kind: input, shape index: {}]   ;;  %s3371_s7 = inlined_call_operand.hbm [shape: f32[32,64], index: 7, kind: input, shape index: {}]   ;;  %s3372_s8 = inlined_call_operand.vmem [shape: f32[1,64], index: 8, kind: input, shape index: {}]   ;;  %s3373_s9 = inlined_call_operand.hbm [shape: f32[32,32], index: 9, kind: input, shape index: {}]   ;;  %s3374_s10 = inlined_call_operand.vmem [shape: f32[2,8,32], index: 10, kind: output, shape index: {}]  }
   0x1   :  { %17 = vsyncpa [#allocation3 + $0x1], 0 }
   0x2   :  { %18 = vsyncpa [#allocation5], 0 }
   0x3   :  { %19 = vsyncpa [#allocation8], 0  ;;  %s2967_s13 = smov 0   ;;  %s2969_s14 = smov 0  }
   0x4   :  { %s2971_s15 = smov 0   ;;  %s2973_s16 = smov 0  }
   0x5 LB: > { %s2986_s17 = sadd.s32 4294967295, %s2894_s16   ;;  %p45_p0 = scmp.ne.s32.totalorder %s2886_s14, %s2882_s13  ;;  %s2894_s16 = sphi %s2973_s16, %s3395_s16   ;;  %s2890_s15 = sphi %s2971_s15, %s3394_s15   ;;  %s2886_s14 = sphi %s2969_s14, %s3393_s14   ;;  %s2882_s13 = sphi %s2967_s13, %s3392_s13  }
   0x6   : > { %p3377_p1 = scmp.eq.s32.totalorder %s2986_s17, 0  ;;  %p2281_p2 = scmp.ge.s32.totalorder %s2894_s16, 1 }
   0x7   : > { %p276_p3 = scmp.lt.s32.totalorder %s2894_s16, 3  ;;  %s2896_s20 = smov [#allocation4]  }
   0x8   : > { %p2994_p4 = por %p3377_p1, %p45_p0  ;;  %s297_s21 = sshll.u32 %s2896_s20, 4  ;;  %s298_s21 = int_to_ptr.vmem [resolvable:$true] %s297_s21 }
   0x9   : > { %p2998_p5 = pnand %p2281_p2, %p276_p3  ;;  %s2897_s23 = smov [#allocation7]  }
   0xa   : > { %s3380_s18 = scalar_select %p2994_p4, 1, 0 }
   0xb   : > { %s3381_s19 = scalar_select %p2998_p5, 1, 0 }
   0xc   : > { %p2612_p6 = pneg %p2998_p5  ;;  %s323_s24 = sshll.u32 %s2897_s23, 4  ;;  %s324_s24 = int_to_ptr.vmem [resolvable:$true] %s323_s24 }
   0xd   : > { %s2898_s25 = smov [#allocation6]   ;;  %s2731_s27 = scalar_lea.vmem %s298_s21, 1152 }
   0xe   : > { %p3006_p7 = pnand %p2612_p6, %p3377_p1  ;;  %s310_s26 = sshll.u32 %s2898_s25, 4  ;;  %s311_s26 = int_to_ptr.vmem [resolvable:$true] %s310_s26 }
   0xf   : > { %p2732_p9 = scmp.ne.s32.totalorder %s298_s21, %s2731_s27  ;;  %p2739_p12 = scmp.lt.s32.totalorder %s298_s21, %s298_s21 }
  0x10   : > { %p2722_p8 = pneg %p3006_p7  ;;  %p2740_p13 = scmp.lt.s32.totalorder %s2731_s27, %s2731_s27 }
  0x12   : > { %p2734_p10 = pnand %p2732_p9, %p2722_p8  ;;  %p2741_p0 = por %p2740_p13, %p2739_p12 }
  0x14   : > { %p2735_p11 = pneg %p2734_p10 }
  0x16   : > { %p2742_p2 = pnand %p2741_p0, %p2735_p11 }
  0x18   : > { %2745 = shalt.err (!%p2742_p2)
}
  0x19   : > { %s3375_s28 = smov 128   ;;  %s3376_s29 = smov 8  }
  0x1a   : > { %2615 = dma.hbm_to_vmem [thread:$0]  (!%p3006_p7), %s3369_s5, 1152, %s298_s21, [#allocation5], %s3375_s28, %s3375_s28, %s3376_s29  }
  0x1b   : > { %s2757_s12 = scalar_lea.vmem %s324_s24, 512  ;;  %p2765_p10 = scmp.lt.s32.totalorder %s324_s24, %s324_s24 }
  0x1c   : > { %p2758_p3 = scmp.ne.s32.totalorder %s324_s24, %s2757_s12  ;;  %p2766_p11 = scmp.lt.s32.totalorder %s2757_s12, %s2757_s12 }
  0x1e   : > { %p2760_p6 = pnand %p2758_p3, %p2722_p8  ;;  %p2767_p12 = por %p2766_p11, %p2765_p10 }
  0x20   : > { %p2761_p9 = pneg %p2760_p6 }
  0x22   : > { %p2768_p13 = pnand %p2767_p12, %p2761_p9 }
  0x24   : > { %2771 = shalt.err (!%p2768_p13)
}
  0x25   : > { %2621 = dma.hbm_to_vmem [thread:$0]  (!%p3006_p7), %s3371_s7, 512, %s324_s24, [#allocation8], %s3375_s28, %s3375_s28, %s3376_s29  }
  0x26   : > { %s2783_s21 = scalar_lea.vmem %s311_s26, 384  ;;  %p2791_p6 = scmp.lt.s32.totalorder %s311_s26, %s311_s26 }
  0x27   : > { %p2784_p0 = scmp.ne.s32.totalorder %s311_s26, %s2783_s21  ;;  %p2792_p9 = scmp.lt.s32.totalorder %s2783_s21, %s2783_s21 }
  0x29   : > { %p2786_p2 = pnand %p2784_p0, %p2722_p8  ;;  %p2793_p10 = por %p2792_p9, %p2791_p6 }
  0x2b   : > { %p2787_p3 = pneg %p2786_p2 }
  0x2d   : > { %p2794_p11 = pnand %p2793_p10, %p2787_p3 }
  0x2f   : > { %2797 = shalt.err (!%p2794_p11)
}
  0x30   : > { %2618 = dma.hbm_to_vmem [thread:$0]  (!%p3006_p7), %s3370_s6, 384, %s311_s26, [#allocation5], %s3375_s28, %s3375_s28, %s3376_s29  }
  0x31   : > { %s2901_s24 = smov [#allocation9]  }
  0x32   : > { %s339_s27 = sshll.u32 %s2901_s24, 4  ;;  %s340_s27 = int_to_ptr.vmem [resolvable:$true] %s339_s27 }
  0x33   : > { %s2809_s30 = scalar_lea.vmem %s340_s27, 512  ;;  %p2817_p2 = scmp.lt.s32.totalorder %s340_s27, %s340_s27 }
  0x34   : > { %p2810_p12 = scmp.ne.s32.totalorder %s340_s27, %s2809_s30  ;;  %p2818_p3 = scmp.lt.s32.totalorder %s2809_s30, %s2809_s30 }
  0x36   : > { %p2812_p13 = pnand %p2810_p12, %p2722_p8  ;;  %p2819_p6 = por %p2818_p3, %p2817_p2 }
  0x38   : > { %p2813_p0 = pneg %p2812_p13 }
  0x3a   : > { %p2820_p9 = pnand %p2819_p6, %p2813_p0 }
  0x3c   : > { %2823 = shalt.err (!%p2820_p9)
}
  0x3d   : > { %2624 = dma.hbm_to_vmem [thread:$0]  (!%p3006_p7), %s3373_s9, 512, %s340_s27, [#allocation8], %s3375_s28, %s3375_s28, %s3376_s29  }
  0x3e   : > { %s3057_s12 = sadd.s32 1, %s2894_s16   ;;  %s32_s22 = sadd.s32 1, %s2890_s15 }
  0x3f   : > { %s29_s13 = ssub.s32 %s2894_s16, %s3057_s12  ;;  %p39_p8 = scmp.ne.s32.totalorder %s2890_s15, %s2886_s14 }
  0x40   : > { %p30_p10 = scmp.eq.s32.totalorder %s29_s13, 0  ;;  %p40_p11 = scmp.eq.s32.totalorder %s2894_s16, 0 }
  0x41   : > { %p2633_p12 = scmp.lt.s32.totalorder %s2894_s16, 2  ;;  %s353_s20 = sand.u32 1, %s2890_s15  }
  0x42   : > { %s3068_s21 = scalar_select %p30_p10, %s2890_s15, %s32_s22  }
  0x43   : > { %p41_p13 = por %p40_p11, %p39_p8  ;;  %s2591_s23 = smul.u32 24, %s353_s20 }
  0x44   : > { %s2592_s25 = smul.u32 384, %s2894_s16  ;;  %s3082_s22 = scalar_lea.sflag [#allocation3], %s353_s20 }
  0x45   : > { %p3071_p0 = pnand %p2633_p12, %p41_p13  ;;  %s357_s11 = scalar_lea.vmem [#allocation2], %s2591_s23 }
  0x46   : > { %s3078_s26 = scalar_lea.hbm %s3364_s0, %s2592_s25  ;;  %s364_s13 = sshll.u32 %s357_s11, 4  ;;  %s3080_s13 = int_to_ptr.vmem [resolvable:$true] %s364_s13 }
  0x47   : > { %s2824_s16 = scalar_lea.hbm %s3078_s26, 384  ;;  %p2826_p2 = pneg %p3071_p0 }
  0x48   : > { %p2825_p7 = scmp.ne.s32.totalorder %s3078_s26, %s2824_s16  ;;  %s2829_s25 = scalar_lea.hbm %s3364_s0, 768 }
  0x49   : > { %p2830_p9 = scmp.lt.s32.totalorder %s3078_s26, %s3364_s0  ;;  %p2831_p8 = scmp.lt.s32.totalorder %s2829_s25, %s2824_s16 }
  0x4a   : > { %p2827_p3 = pnand %p2826_p2, %p2825_p7 }
  0x4b   : > { %p2832_p10 = por %p2831_p8, %p2830_p9 }
  0x4c   : > { %p2828_p6 = pneg %p2827_p3 }
  0x4e   : > { %p2833_p11 = pnand %p2832_p10, %p2828_p6 }
  0x50   : > { %2836 = shalt.err (!%p2833_p11)
}
  0x51   : > { %s2837_s20 = scalar_lea.vmem %s3080_s13, 384  ;;  %s2902_s23 = smov [#allocation2]  }
  0x52   : > { %p2838_p12 = scmp.ne.s32.totalorder %s3080_s13, %s2837_s20  ;;  %s2842_s11 = sshll.u32 %s2902_s23, 4  ;;  %s2843_s11 = int_to_ptr.vmem [resolvable:$false] %s2842_s11 }
  0x53   : > { %s2844_s28 = scalar_lea.vmem %s2843_s11, 768  ;;  %p2845_p3 = scmp.lt.s32.totalorder %s3080_s13, %s2843_s11 }
  0x54   : > { %p2840_p13 = pnand %p2838_p12, %p2826_p2  ;;  %p2846_p1 = scmp.lt.s32.totalorder %s2844_s28, %s2837_s20 }
  0x56   : > { %p2841_p7 = pneg %p2840_p13  ;;  %p2847_p4 = por %p2846_p1, %p2845_p3 }
  0x58   : > { %p2848_p5 = pnand %p2847_p4, %p2841_p7 }
  0x5a   : > { %2851 = shalt.err (!%p2848_p5)
}
  0x5b   : > { %s3384_s29 = smov 8   ;;  %s3385_s16 = smov 128  }
  0x5c   : > { %2628 = dma.hbm_to_vmem [thread:$0]  (!%p3071_p0), %s3078_s26, 384, %s3080_s13, %s3082_s22, %s3385_s16, %s3385_s16, %s3384_s29  }
  0x5d   : > { %p3386_p2 = scmp.ne.s32.totalorder %s3381_s19, 0 }
  0x5e   : > { %s385_s27 = sand.u32 (!%p3386_p2), 1, %s2886_s14   ;;  %p3387_p1 = scmp.ne.s32.totalorder (!%p3386_p2), %s3380_s18, 0 }
  0x5f   : > { %383 = sbr.rel (%p3386_p2) target bundleno = 3029 (0xbd5), region = 60  ;;  %s386_s30 = scalar_lea.sflag (!%p3386_p2), [#allocation3], %s385_s27 }
  0x60   : > { %s2593_s25 = smul.u32 (!%p3386_p2), 24, %s385_s27 }
  0x62   : > { %s3109_s20 = scalar_lea.vmem (!%p3386_p2), [#allocation2], %s2593_s25 }
  0x64   : > { %2869 = dma.done.wait (%p3387_p1), %s386_s30, 384  }
  0x65   : > { %2871 = vsyncadd (%p3387_p1), %s386_s30, 4294966912  ;;  %p3388_p4 = scmp.eq.s32.totalorder %s2986_s17, 0 }
  0x67   : > { %2873 = dma.done.wait (%p3388_p4), [#allocation5], 1536   ;;  %p3389_p5 = pmov %p3388_p4 }
  0x68   : > { %p3390_p0 = pmov %p3388_p4 }
  0x69   : > { %2875 = vsyncadd (%p3389_p5), [#allocation5], 4294965760 }
  0x6a   : > { %2877 = dma.done.wait (%p3390_p0), [#allocation8], 1024   ;;  %p3391_p6 = pmov %p3390_p0 }
  0x6b   : > { %v2903_v0 = vmov 0.0   ;;  %vm2904_vm0 = vmmov 0   ;;  %v459_v1 = vld [vmem:[%s3366_s2 + $0x18] sm:$0xff]  ;;  %v458_v2 = vld [vmem:[%s3366_s2 + $0x10] sm:$0xff]  ;;  %v457_v3 = vld [vmem:[%s3366_s2 + $0x8] sm:$0xff]  ;;  %vm467_vm1 = vcmask 261120  }
  0x6c   : > { %2879 = vsyncadd (%p3391_p6), [#allocation8], 4294966272  ;;  %2414 = vmatprep.subr.mxu0 %v2903_v0  ;;  %2422 = vmatprep.mubr.msk.f32.mxu0 %vm2904_vm0, %v2903_v0  ;;  %v456_v4 = vld [vmem:[%s3366_s2] sm:$0xff]  ;;  %v455_v7 = vld [vmem:[%s3109_s20 + $0x10] sm:$0xff]  ;;  %v2905_v8 = vmov 97   ;;  %s2906_s16 = smov 96  }
  0x6d   : > { %2431 = vmatprep.subr.mxu1 %v2903_v0  ;;  %2437 = vmatprep.mubr.msk.f32.mxu1 %vm2904_vm0, %v2903_v0  ;;  %v453_v5 = vld [vmem:[%s3109_s20] sm:$0xff]  ;;  %v454_v6 = vld [vmem:[%s3109_s20 + $0x8] sm:$0xff]  ;;  %s2907_s27 = smov 56   ;;  %vm559_vm2 = vcmask 195584   ;;  %v2908_v25 = vmov 96   ;;  %s2909_s20 = smov 64  }
  0x6e   : > { %2415 = vmatpush3.msra.mxu0 %v459_v1  ;;  %2685 = vset.pattern.permute.xlu1 %v2905_v8  ;;  %v2295_v9 = vld [vmem:[%s3367_s3] ss:$0 sm:$0xff]  ;;  %v834_v40 = vld [vmem:[#allocation4] sm:$0xff]  ;;  %v1016_v41 = vld [vmem:[#allocation4 + $0x18] sm:$0xff]  ;;  %vm1477_vm12 = vcmask 64512   ;;  %s2911_s18 = smov 8  }
  0x6f   : > { %2416 = vmatprep.subr.mxu0 %v2903_v0  ;;  %2686 = vset.pattern.permute.xlu0 %v2905_v8  ;;  %v3169_v19 = vld [vmem:[%s3368_s4] sm:$0xff]  ;;  %v835_v47 = vld [vmem:[#allocation4 + $0x8] sm:$0xff]  ;;  %v1017_v48 = vld [vmem:[#allocation4 + $0x20] sm:$0xff]  ;;  %p445_p9 = scmp.lt.s32.totalorder %s2986_s17, 1 }
  0x70   : > { %2417 = vmatpush3.msra.mxu0 %v458_v2  ;;  %v558_v20 = vmul.f32 0.125, %v3169_v19  ;;  %v836_v54 = vld [vmem:[#allocation4 + $0x10] sm:$0xff]  ;;  %v1018_v55 = vld [vmem:[#allocation4 + $0x28] sm:$0xff] }
  0x71   : > { %2418 = vmatprep.subr.mxu0 %v2903_v0  ;;  %v1191_v8 = vld [vmem:[#allocation4 + $0x30] sm:$0xff]  ;;  %s3397_s17 = smov (!%p445_p9, %s2986_s17), 1 }
  0x72   : > { %2419 = vmatpush3.msra.mxu0 %v457_v3  ;;  %s2293_s19 = sshll.u32 %s3397_s17, 3 }
  0x73   : > { %2420 = vmatprep.subr.mxu0 %v2903_v0  ;;  %s448_s13 = scalar_lea.vmem %s3365_s1, %s2293_s19  ;;  %s452_s29 = scalar_lea.vmem %s3374_s10, %s2293_s19 }
  0x74   : > { %2421 = vmatpush3.msra.mxu0 %v456_v4 }
  0x75   : > { %2423 = vmatmul.mubr.msk.f32.vlgmr.msra.gmra.mxu0 %vm467_vm1, %v453_v5  ;;  %2449 = vmatprep.subr.mxu0 %v2903_v0 }
  0x76   : > { %2425 = vmatprep.mubr.msk.f32.mxu0 %vm2904_vm0, %v2903_v0 }
  0x79   : > { %2426 = vmatmul.mubr.msk.f32.gmra.mxu0 %vm467_vm1, %v454_v6 }
  0x7a   : > { %2428 = vmatprep.mubr.msk.f32.mxu0 %vm2904_vm0, %v2903_v0 }
  0x7d   : > { %2429 = vmatmul.mubr.msk.f32.gmra.mxu0 %vm467_vm1, %v455_v7 }
  0x7e   : > { %2455 = vmatprep.mubr.msk.f32.mxu0 %vm2904_vm0, %v2903_v0 }
 0x135   : > { %v543_v10 = vpop.f32.mrf.mxu0 }
 0x136   : > { %v544_v11 = vadd.f32 %v2295_v9, %v543_v10  ;;  %v1192_v10 = vld [vmem:[#allocation4 + $0x38] sm:$0xff] }
 0x137   : > { %v2424_v12 = vpop.f32.mrf.mxu0 }
 0x138   : > { %706 = vrot.lane.b32.xlu1 %v544_v11, %s2906_s16  ;;  %v1193_v12 = vld [vmem:[#allocation4 + $0x40] sm:$0xff] }
 0x139   : > { %v548_v13 = vpop.f32.mrf.mxu0 }
 0x13a   : > { %v549_v18 = vadd.f32 %v2295_v9, %v548_v13 }
 0x13b   : > { %v2427_v14 = vpop.f32.mrf.mxu0 }
 0x13c   : > { %811 = vperm.xlu1 %2685, %v544_v11  }
 0x13d   : > { %v553_v15 = vpop.f32.mrf.mxu0 }
 0x13e   : > { %v554_v16 = vadd.f32 %v2295_v9, %v553_v15 }
 0x13f   : > { %v2430_v17 = vpop.f32.mrf.mxu0 }
 0x140   : > { %819 = vperm.xlu1 %2685, %v554_v16   ;;  %710 = vrot.lane.b32.xlu0 %v554_v16, %s2906_s16 }
 0x141   : > { %2432 = vmatpush3.msra.mxu1 %v554_v16 }
 0x142   : > { %2433 = vmatprep.subr.mxu1 %v2903_v0 }
 0x143   : > { %2434 = vmatpush3.msra.mxu1 %v549_v18 }
 0x144   : > { %2435 = vmatprep.subr.mxu1 %v2903_v0  ;;  %1375 = vrot.lane.b32.xlu1 %v554_v16, %s2907_s27 }
 0x145   : > { %708 = vrot.lane.b32.xlu0 %v549_v18, %s2906_s16  ;;  %2436 = vmatpush3.msra.mxu1 %v544_v11 }
 0x146   : > { %2440 = vmatprep.subr.mxu1 %v2903_v0  ;;  %2438 = vmatmul.mubr.msk.f32.vlgmr.msra.gmra.mxu1 %vm559_vm2, %v558_v20 }
 0x147   : > { %2441 = vmatpush3.msra.mxu1 %v455_v7  ;;  %2446 = vmatprep.mubr.msk.f32.mxu1 %vm2904_vm0, %v2903_v0 }
 0x148   : > { %1371 = vrot.lane.b32.xlu1 %v544_v11, %s2907_s27  ;;  %2442 = vmatprep.subr.mxu1 %v2903_v0 }
 0x149   : > { %815 = vperm.xlu0 %2686, %v549_v18   ;;  %2443 = vmatpush3.msra.mxu1 %v454_v6 }
 0x14a   : > { %2444 = vmatprep.subr.mxu1 %v2903_v0 }
 0x14b   : > { %2445 = vmatpush3.msra.mxu1 %v453_v5 }
 0x14c   : > { %2447 = vmatmul.mubr.msk.f32.vlgmr.msra.gmra.mxu1 %vm559_vm2, %v558_v20  ;;  %2464 = vmatprep.subr.mxu1 %v2903_v0 }
 0x14d   : > { %1373 = vrot.lane.b32.xlu0 %v549_v18, %s2907_s27  ;;  %2465 = vmatpush3.xpose.msk.msra.mxu1 %vm559_vm2, %v3169_v19 }
 0x14e   : > { %2466 = vmatprep.mubr.msk.f32.mxu1 %vm2904_vm0, %v2903_v0  ;;  %2475 = vmatprep.subr.mxu1 %v2903_v0 }
 0x14f   : > { %2687 = vset.pattern.permute.xlu0 %v2908_v25 }
 0x1aa   : > { %v707_v23 = vpop.permute.xlu1 %706 }
 0x1b2   : > { %v711_v21 = vpop.permute.xlu0 %710 }
 0x1b3   : > { %2450 = vmatpush3.xpose.msk.msra.mxu0 %vm467_vm1, %v711_v21 }
 0x1b4   : > { %2451 = vmatprep.subr.mxu0 %v2903_v0 }
 0x1b7   : > { %v709_v22 = vpop.permute.xlu0 %708  ;;  %v812_v39 = vpop.permute.xlu1 %811 }
 0x1b8   : > { %2452 = vmatpush3.xpose.msk.msra.mxu0 %vm467_vm1, %v709_v22 }
 0x1b9   : > { %2453 = vmatprep.subr.mxu0 %v2903_v0 }
 0x1bb   : > { %v820_v53 = vpop.permute.xlu1 %819 }
 0x1bc   : > { %2454 = vmatpush3.xpose.msk.msra.mxu0 %vm467_vm1, %v707_v23 }
 0x1bd   : > { %2484 = vmatprep.subr.mxu0 %v2903_v0 }
 0x1bf   : > { %2456 = vmatmul.mubr.msk.f32.vlgmr.msra.gmra.mxu0 %vm467_vm1, %v544_v11 }
 0x1c0   : > { %2458 = vmatprep.mubr.msk.f32.mxu0 %vm2904_vm0, %v2903_v0  ;;  %2485 = vmatpush3.xpose.msk.msra.mxu0 %vm559_vm2, %v3169_v19 }
 0x1c1   : > { %2515 = vmatprep.subr.mxu0 %v2903_v0 }
 0x1c3   : > { %2459 = vmatmul.mubr.msk.f32.gmra.mxu0 %vm467_vm1, %v549_v18 }
 0x1c4   : > { %2461 = vmatprep.mubr.msk.f32.mxu0 %vm2904_vm0, %v2903_v0  ;;  %v816_v46 = vpop.permute.xlu0 %815 }
 0x1c7   : > { %2462 = vmatmul.mubr.msk.f32.gmra.mxu0 %vm467_vm1, %v554_v16 }
 0x1c8   : > { %2486 = vmatprep.mubr.msk.f32.mxu0 %vm2904_vm0, %v2903_v0  ;;  %v1374_v14 = vpop.permute.xlu0 %1373 }
 0x206   : > { %v629_v24 = vpop.f32.mrf.mxu1 }
 0x207   : > { %1004 = vperm.xlu0 %2687, %v629_v24  }
 0x208   : > { %v2439_v26 = vpop.f32.mrf.mxu1 }
 0x20b   : > { %1709 = vrot.lane.b32.xlu0 %v629_v24, %s2909_s20 }
 0x20c   : > { %v3202_v27 = vpop.f32.mrf.mxu1 }
 0x20e   : > { %v2448_v28 = vpop.f32.mrf.mxu1 }
 0x27f   : > { %v790_v29 = vpop.f32.mrf.mxu0 }
 0x280   : > { %v804_v30 = vmul.f32 1.442695, %v790_v29 }
 0x281   : > { %v2457_v31 = vpop.f32.mrf.mxu0 }
 0x282   : > { %2688 = vpow2.f32 %v804_v30  ;;  %v1005_v15 = vpop.permute.xlu0 %1004 }
 0x283   : > { %v795_v32 = vpop.f32.mrf.mxu0 }
 0x284   : > { %v806_v33 = vmul.f32 1.442695, %v795_v32 }
 0x285   : > { %v2460_v34 = vpop.f32.mrf.mxu0 }
 0x286   : > { %2690 = vpow2.f32 %v806_v33  ;;  %v1376_v34 = vpop.permute.xlu1 %1375 }
 0x287   : > { %v800_v35 = vpop.f32.mrf.mxu0 }
 0x288   : > { %v808_v36 = vmul.f32 1.442695, %v800_v35 }
 0x289   : > { %v2463_v37 = vpop.f32.mrf.mxu0 }
 0x28a   : > { %2692 = vpow2.f32 %v808_v36  ;;  %v1368_v37 = vld [vmem:[#allocation6] sm:$0xff] }
 0x28f   : > { %v2689_v38 = vpop.eup %2688 }
 0x290   : > { %v822_v42 = vmul.f32 %v2689_v38, %v812_v39  ;;  %v1372_v38 = vpop.permute.xlu1 %1371 }
 0x292   : > { %v837_v43 = vmul.f32 %v834_v40, %v822_v42  ;;  %v1019_v44 = vmul.f32 %v1016_v41, %v822_v42  ;;  %v1194_v9 = vmul.f32 %v1191_v8, %v822_v42  ;;  %v1370_v40 = vld [vmem:[#allocation6 + $0x10] sm:$0xff] }
 0x293   : > { %v2691_v45 = vpop.eup %2690 }
 0x294   : > { %2467 = vmatmul.mubr.msk.f32.vlgmr.msra.gmra.mxu1 %vm559_vm2, %v837_v43  ;;  %2487 = vmatmul.mubr.msk.f32.vlgmr.msra.gmra.mxu0 %vm559_vm2, %v1019_v44  ;;  %v823_v49 = vmul.f32 %v2691_v45, %v816_v46 }
 0x295   : > { %2469 = vmatprep.mubr.msk.f32.mxu1 %vm2904_vm0, %v2903_v0  ;;  %2489 = vmatprep.mubr.msk.f32.mxu0 %vm2904_vm0, %v2903_v0 }
 0x296   : > { %v838_v50 = vmul.f32 %v835_v47, %v823_v49  ;;  %v1020_v51 = vmul.f32 %v1017_v48, %v823_v49  ;;  %v1195_v11 = vmul.f32 %v1192_v10, %v823_v49  ;;  %v1823_v10 = vld [vmem:[#allocation7 + $0x10] sm:$0xff] }
 0x297   : > { %v2693_v52 = vpop.eup %2692 }
 0x298   : > { %2470 = vmatmul.mubr.msk.f32.gmra.mxu1 %vm559_vm2, %v838_v50  ;;  %2490 = vmatmul.mubr.msk.f32.gmra.mxu0 %vm559_vm2, %v1020_v51  ;;  %v824_v56 = vmul.f32 %v2693_v52, %v820_v53 }
 0x299   : > { %2472 = vmatprep.mubr.msk.f32.mxu1 %vm2904_vm0, %v2903_v0  ;;  %2492 = vmatprep.mubr.msk.f32.mxu0 %vm2904_vm0, %v2903_v0 }
 0x29a   : > { %v839_v57 = vmul.f32 %v836_v54, %v824_v56  ;;  %v1021_v58 = vmul.f32 %v1018_v55, %v824_v56  ;;  %v1196_v13 = vmul.f32 %v1193_v12, %v824_v56  ;;  %v825_v56 = vlaneseq }
 0x29c   : > { %2473 = vmatmul.mubr.msk.f32.gmra.mxu1 %vm559_vm2, %v839_v57  ;;  %2493 = vmatmul.mubr.msk.f32.gmra.mxu0 %vm559_vm2, %v1021_v58  ;;  %v826_v57 = vshrl.u32 %v825_v56, 7  ;;  %v3269_v58 = vand.u32 127, %v825_v56 }
 0x29d   : > { %2481 = vmatprep.mubr.msk.f32.mxu1 %vm2904_vm0, %v2903_v0  ;;  %2521 = vmatprep.mubr.msk.f32.mxu0 %vm2904_vm0, %v2903_v0 }
 0x29e   : > { %vm829_vm5 = vcmp.lt.s32.totalorder %v826_v57, 3  ;;  %vm830_vm6 = vcmp.lt.s32.totalorder %v3269_v58, 3  ;;  %vm832_vm8 = vcmp.ne.s32.totalorder %v826_v57, %v3269_v58 }
 0x29f   : > { %vm831_vm7 = vmand %vm829_vm5, %vm830_vm6  ;;  %vm1728_vm5 = vcmask 23552  }
 0x2a0   : > { %vm833_vm9 = vmand %vm831_vm7, %vm832_vm8  ;;  %vm1733_vm7 = vcmask 31744  }
 0x354   : > { %v918_v59 = vpop.f32.mrf.mxu1  ;;  %v1097_v60 = vpop.f32.mrf.mxu0 }
 0x356   : > { %v2468_v61 = vpop.f32.mrf.mxu1  ;;  %v2488_v62 = vpop.f32.mrf.mxu0 }
 0x358   : > { %v923_v63 = vpop.f32.mrf.mxu1  ;;  %v1102_v1 = vpop.f32.mrf.mxu0 }
 0x35a   : > { %v2471_v2 = vpop.f32.mrf.mxu1  ;;  %v2491_v3 = vpop.f32.mrf.mxu0 }
 0x35c   : > { %v928_v4 = vpop.f32.mrf.mxu1  ;;  %v1107_v5 = vpop.f32.mrf.mxu0 }
 0x35d   : > { %2476 = vmatpush3.msra.mxu1 %v928_v4 }
 0x35e   : > { %v2474_v6 = vpop.f32.mrf.mxu1  ;;  %2477 = vmatprep.subr.mxu1 %v2903_v0  ;;  %v2494_v7 = vpop.f32.mrf.mxu0 }
 0x35f   : > { %2478 = vmatpush3.msra.mxu1 %v923_v63 }
 0x360   : > { %2479 = vmatprep.subr.mxu1 %v2903_v0 }
 0x361   : > { %2480 = vmatpush3.msra.mxu1 %v918_v59 }
 0x362   : > { %2482 = vmatmul.mubr.msk.f32.vlgmr.msra.gmra.mxu1 %vm559_vm2, %v3169_v19  ;;  %2495 = vmatprep.subr.mxu1 %v2903_v0 }
 0x363   : > { %2496 = vmatpush3.msra.mxu1 %v1107_v5  ;;  %2501 = vmatprep.mubr.msk.f32.mxu1 %vm2904_vm0, %v2903_v0 }
 0x364   : > { %2497 = vmatprep.subr.mxu1 %v2903_v0 }
 0x365   : > { %2498 = vmatpush3.msra.mxu1 %v1102_v1 }
 0x366   : > { %2499 = vmatprep.subr.mxu1 %v2903_v0 }
 0x367   : > { %2500 = vmatpush3.msra.mxu1 %v1097_v60  ;;  %v2910_v60 = vmov 0  }
 0x368   : > { %2502 = vmatmul.mubr.msk.f32.vlgmr.msra.gmra.mxu1 %vm559_vm2, %v3169_v19  ;;  %2504 = vmatprep.subr.mxu1 %v2903_v0 }
 0x369   : > { %2505 = vmatpush3.xpose.msk.msra.mxu1 %vm559_vm2, %v3169_v19  ;;  %2506 = vmatprep.mubr.msk.f32.mxu1 %vm2904_vm0, %v2903_v0 }
 0x36a   : > { %2539 = vmatprep.subr.mxu1 %v2903_v0 }
 0x36c   : > { %2507 = vmatmul.mubr.msk.f32.vlgmr.msra.gmra.mxu1 %vm559_vm2, %v1194_v9  ;;  %v1824_v9 = vld [vmem:[#allocation7 + $0x18] sm:$0xff] }
 0x36d   : > { %2509 = vmatprep.mubr.msk.f32.mxu1 %vm2904_vm0, %v2903_v0 }
 0x370   : > { %2510 = vmatmul.mubr.msk.f32.gmra.mxu1 %vm559_vm2, %v1195_v11  ;;  %v1822_v11 = vld [vmem:[#allocation7 + $0x8] sm:$0xff] }
 0x371   : > { %2512 = vmatprep.mubr.msk.f32.mxu1 %vm2904_vm0, %v2903_v0 }
 0x374   : > { %2513 = vmatmul.mubr.msk.f32.gmra.mxu1 %vm559_vm2, %v1196_v13 }
 0x375   : > { %2541 = vmatprep.mubr.msk.f32.mxu1 %vm2904_vm0, %v2903_v0 }
 0x422   : > { %v998_v16 = vpop.f32.mrf.mxu1 }
 0x423   : > { %v1007_v17 = vadd.f32 %v1005_v15, %v998_v16 }
 0x424   : > { %v2483_v18 = vpop.f32.mrf.mxu1 }
 0x425   : > { %v1008_v20 = vmul.f32 1.442695, %v1007_v17 }
 0x427   : > { %2694 = vpow2.f32 %v1008_v20 }
 0x428   : > { %v1177_v21 = vpop.f32.mrf.mxu1 }
 0x429   : > { %v1181_v22 = vadd.f32 %v1177_v21, %v1005_v15 }
 0x42a   : > { %v2503_v23 = vpop.f32.mrf.mxu1 }
 0x42b   : > { %v1182_v24 = vmul.f32 1.442695, %v1181_v22 }
 0x42c   : > { %v1272_v25 = vpop.f32.mrf.mxu1 }
 0x42d   : > { %2696 = vpow2.f32 %v1182_v24 }
 0x42e   : > { %v2508_v26 = vpop.f32.mrf.mxu1 }
 0x42f   : > { %v1721_v26 = vld [vmem:[%s448_s13] sm:$0xff] }
 0x430   : > { %v1277_v28 = vpop.f32.mrf.mxu1 }
 0x432   : > { %v2511_v29 = vpop.f32.mrf.mxu1 }
 0x434   : > { %v2695_v30 = vpop.eup %2694  ;;  %v1282_v31 = vpop.f32.mrf.mxu1 }
 0x435   : > { %v1010_v32 = vadd.f32 1.0, %v2695_v30  ;;  %2516 = vmatpush3.msra.mxu0 %v1282_v31  ;;  %v1710_v30 = vpop.permute.xlu0 %1709 }
 0x436   : > { %v2514_v33 = vpop.f32.mrf.mxu1  ;;  %2517 = vmatprep.subr.mxu0 %v2903_v0 }
 0x437   : > { %2698 = vrcp.f32 %v1010_v32  ;;  %2518 = vmatpush3.msra.mxu0 %v1277_v28  ;;  %v1722_v28 = vmul.f32 %v1721_v26, %v1721_v26 }
 0x438   : > { %2519 = vmatprep.subr.mxu0 %v2903_v0 }
 0x439   : > { %2520 = vmatpush3.msra.mxu0 %v1272_v25 }
 0x43a   : > { %v2697_v35 = vpop.eup %2696  ;;  %2522 = vmatmul.mubr.msk.f32.vlgmr.msra.gmra.mxu0 %vm559_vm2, %v3169_v19  ;;  %2524 = vmatprep.subr.mxu0 %v2903_v0  ;;  %v1369_v19 = vld [vmem:[#allocation6 + $0x8] sm:$0xff] }
 0x43b   : > { %v1184_v36 = vadd.f32 1.0, %v2697_v35  ;;  %2525 = vmatpush3.msra.mxu0 %v1376_v34  ;;  %2530 = vmatprep.mubr.msk.f32.mxu0 %vm2904_vm0, %v2903_v0  ;;  %v1730_v34 = vmul.f32 -2.0, %v1721_v26 }
 0x43c   : > { %2526 = vmatprep.subr.mxu0 %v2903_v0 }
 0x43d   : > { %2700 = vrcp.f32 %v1184_v36  ;;  %2527 = vmatpush3.msra.mxu0 %v1374_v14 }
 0x43e   : > { %2528 = vmatprep.subr.mxu0 %v2903_v0 }
 0x43f   : > { %2529 = vmatpush3.msra.mxu0 %v1372_v38 }
 0x440   : > { %2531 = vmatmul.mubr.msk.f32.vlgmr.msra.gmra.mxu0 %vm559_vm2, %v1368_v37  ;;  %2554 = vmatprep.subr.mxu0 %v2903_v0 }
 0x441   : > { %2533 = vmatprep.mubr.msk.f32.mxu0 %vm2904_vm0, %v2903_v0 }
 0x444   : > { %v2699_v39 = vpop.eup %2698  ;;  %2534 = vmatmul.mubr.msk.f32.gmra.mxu0 %vm559_vm2, %v1369_v19 }
 0x445   : > { %2536 = vmatprep.mubr.msk.f32.mxu0 %vm2904_vm0, %v2903_v0  ;;  %vm1013_vm3 = vcmp.gt.f32.partialorder %v2699_v39, 0.0 }
 0x446   : > { %v1014_v42 = vsel %vm1013_vm3, %v2699_v39, 0.0  ;;  %vm1723_vm3 = vcmask 15360  }
 0x447   : > { %v1724_v29 = vsel %vm1723_vm3, %v1722_v28, 0.0  ;;  %v1731_v37 = vsel %vm1723_vm3, %v1730_v34, 1.0 }
 0x448   : > { %2537 = vmatmul.mubr.msk.f32.gmra.mxu0 %vm559_vm2, %v1370_v40 }
 0x449   : > { %2556 = vmatprep.mubr.msk.f32.mxu0 %vm2904_vm0, %v2903_v0 }
 0x44a   : > { %v2701_v41 = vpop.eup %2700 }
 0x44b   : > { %vm1187_vm4 = vcmp.gt.f32.partialorder %v2701_v41, %v1014_v42 }
 0x44c   : > { %v1189_v43 = vsel %vm1187_vm4, %v2701_v41, %v1014_v42  ;;  %v1188_v61 = vsel %vm1187_vm4, 1, %v2910_v60 }
 0x4fa   : > { %v1352_v44 = vpop.f32.mrf.mxu0 }
 0x4fb   : > { %v1356_v45 = vadd.f32 %v1352_v44, %v1005_v15  ;;  %v1821_v15 = vld [vmem:[#allocation7] sm:$0xff] }
 0x4fc   : > { %v2523_v46 = vpop.f32.mrf.mxu0 }
 0x4fd   : > { %v1357_v47 = vmul.f32 1.442695, %v1356_v45 }
 0x4ff   : > { %2702 = vpow2.f32 %v1357_v47 }
 0x500   : > { %v1455_v48 = vpop.f32.mrf.mxu0 }
 0x502   : > { %v2532_v49 = vpop.f32.mrf.mxu0 }
 0x504   : > { %v1460_v50 = vpop.f32.mrf.mxu0 }
 0x505   : > { %2540 = vmatpush3.msra.mxu1 %v1460_v50 }
 0x506   : > { %v2535_v51 = vpop.f32.mrf.mxu0  ;;  %2544 = vmatprep.subr.mxu1 %v2903_v0 }
 0x508   : > { %v1465_v52 = vpop.f32.mrf.mxu0 }
 0x50a   : > { %v2538_v53 = vpop.f32.mrf.mxu0 }
 0x50c   : > { %v2703_v54 = vpop.eup %2702 }
 0x50d   : > { %v1359_v55 = vadd.f32 1.0, %v2703_v54 }
 0x50f   : > { %2704 = vrcp.f32 %v1359_v55 }
 0x51c   : > { %v2705_v59 = vpop.eup %2704 }
 0x51d   : > { %vm1362_vm10 = vcmp.gt.f32.partialorder %v2705_v59, %v1189_v43 }
 0x51e   : > { %v1364_v62 = vsel %vm1362_vm10, %v2705_v59, %v1189_v43  ;;  %v1363_v63 = vsel %vm1362_vm10, 2, %v1188_v61 }
 0x51f   : > { %vm1365_vm11 = vcmp.gt.f32.partialorder %v1364_v62, 0.3  ;;  %vm1473_vm13 = vcmp.eq.s32.totalorder %v1363_v63, 1  ;;  %vm1469_vm15 = vcmp.eq.s32.totalorder %v1363_v63, 0  ;;  %vm1624_vm2 = vcmp.eq.s32.totalorder %v1363_v63, 2 }
 0x520   : > { %vm1366_vm14 = vmand %vm833_vm9, %vm1365_vm11  ;;  %v2326_v1 = vsel %vm1473_vm13, 1.0, %v2903_v0  ;;  %v2325_v5 = vsel %vm1469_vm15, 1.0, %v2903_v0  ;;  %v2329_v7 = vsel %vm1624_vm2, 1.0, %v2903_v0 }
 0x521   : > { %v3278_v2 = vsel %vm1366_vm14, 1.0, %v2903_v0 }
 0x522   : > { %v1702_v3 = vsel %vm1477_vm12, %v3278_v2, 0.0  ;;  %v1476_v4 = vmul.f32 %v2326_v1, %v3278_v2  ;;  %v1472_v6 = vmul.f32 %v2325_v5, %v3278_v2  ;;  %v1627_v8 = vmul.f32 %v2329_v7, %v3278_v2 }
 0x523   : > { %1703 = vadd.xlane.f32.xlu1 %v1702_v3 }
 0x524   : > { %2542 = vmatmul.mubr.msk.f32.vlgmr.msra.gmra.mxu1 %vm1477_vm12, %v1476_v4 }
 0x525   : > { %2545 = vmatpush3.msra.mxu1 %v1455_v48  ;;  %2546 = vmatprep.mubr.msk.f32.mxu1 %vm2904_vm0, %v2903_v0 }
 0x526   : > { %2549 = vmatprep.subr.mxu1 %v2903_v0 }
 0x528   : > { %2547 = vmatmul.mubr.msk.f32.vlgmr.msra.gmra.mxu1 %vm1477_vm12, %v1472_v6 }
 0x529   : > { %2550 = vmatpush3.msra.mxu1 %v1465_v52  ;;  %2551 = vmatprep.mubr.msk.f32.mxu1 %vm2904_vm0, %v2903_v0 }
 0x52a   : > { %2559 = vmatprep.subr.mxu1 %v2903_v0 }
 0x52c   : > { %2552 = vmatmul.mubr.msk.f32.vlgmr.msra.gmra.mxu1 %vm1477_vm12, %v1627_v8 }
 0x52d   : > { %2567 = vmatprep.mubr.msk.f32.mxu1 %vm2904_vm0, %v2903_v0  ;;  %2560 = vmatpush3.msra.mxu1 %v1824_v9 }
 0x52e   : > { %2561 = vmatprep.subr.mxu1 %v2903_v0 }
 0x52f   : > { %2562 = vmatpush3.msra.mxu1 %v1823_v10 }
 0x530   : > { %2563 = vmatprep.subr.mxu1 %v2903_v0 }
 0x531   : > { %2564 = vmatpush3.msra.mxu1 %v1822_v11 }
 0x532   : > { %2565 = vmatprep.subr.mxu1 %v2903_v0 }
 0x533   : > { %2566 = vmatpush3.msra.mxu1 %v1821_v15 }
 0x534   : > { %2580 = vmatprep.subr.mxu1 %v2903_v0 }
 0x5ac   : > { %v1704_v12 = vpop.xlane.xlu1 %1703 }
 0x5ad   : > { %v1705_v13 = vmax.f32 %v1704_v12, 1.0  ;;  %vm1717_vm4 = vcmp.gt.f32.partialorder %v1704_v12, 0.0  ;;  %v2089_v12 = vld [vmem:[#allocation9 + $0x18] sm:$0xff] }
 0x5af   : > { %2706 = vrcp.f32 %v1705_v13  ;;  %v2088_v13 = vld [vmem:[#allocation9 + $0x10] sm:$0xff] }
 0x5bc   : > { %v2707_v23 = vpop.eup %2706 }
 0x5e4   : > { %v1547_v14 = vpop.f32.mrf.mxu1 }
 0x5e6   : > { %v2543_v16 = vpop.f32.mrf.mxu1 }
 0x5e8   : > { %v1620_v17 = vpop.f32.mrf.mxu1 }
 0x5e9   : > { %v1621_v20 = vadd.f32 %v1620_v17, %v1547_v14 }
 0x5ea   : > { %v2548_v18 = vpop.f32.mrf.mxu1 }
 0x5eb   : > { %v2087_v18 = vld [vmem:[#allocation9 + $0x8] sm:$0xff] }
 0x5ec   : > { %v1697_v21 = vpop.f32.mrf.mxu1 }
 0x5ed   : > { %v1701_v22 = vadd.f32 %v1697_v21, %v1621_v20  ;;  %v2086_v20 = vld [vmem:[#allocation9] sm:$0xff] }
 0x5ee   : > { %v2553_v24 = vpop.f32.mrf.mxu1 }
 0x5ef   : > { %v1708_v25 = vmul.f32 %v2707_v23, %v1701_v22 }
 0x5f1   : > { %1713 = vrot.lane.b32.xlu0 %v1708_v25, %s2911_s18 }
 0x610   : > { %1725 = vadd.xlane.f32.xlu0 %v1724_v29 }
 0x663   : > { %v1714_v31 = vpop.permute.xlu0 %1713 }
 0x664   : > { %v1716_v32 = vsel %vm1477_vm12, %v1710_v30, %v1714_v31 }
 0x665   : > { %v3314_v33 = vsel %vm1717_vm4, %v1716_v32, %v3202_v27  ;;  %v2333_v27 = vld [vmem:[%s3372_s8] ss:$0 sm:$0xff] }
 0x666   : > { %2568 = vmatmul.mubr.msk.f32.vlgmr.msra.gmra.mxu1 %vm467_vm1, %v3314_v33 }
 0x667   : > { %2588 = vmatprep.mubr.msk.f32.mxu1 %vm2904_vm0, %v2903_v0  ;;  %2581 = vmatpush3.msra.mxu1 %v2089_v12 }
 0x668   : > { %2582 = vmatprep.subr.mxu1 %v2903_v0 }
 0x669   : > { %2583 = vmatpush3.msra.mxu1 %v2088_v13 }
 0x66a   : > { %2584 = vmatprep.subr.mxu1 %v2903_v0 }
 0x66b   : > { %2585 = vmatpush3.msra.mxu1 %v2087_v18 }
 0x66c   : > { %2586 = vmatprep.subr.mxu1 %v2903_v0 }
 0x66d   : > { %2587 = vmatpush3.msra.mxu1 %v2086_v20 }
 0x699   : > { %v1726_v35 = vpop.xlane.xlu0 %1725 }
 0x69a   : > { %v1727_v36 = vsel %vm1723_vm3, %v1721_v26, %v1726_v35  ;;  %v1732_v38 = vsel %vm1728_vm5, %v1731_v37, %v1726_v35 }
 0x69b   : > { %v1729_v19 = vsel %vm1728_vm5, %v1727_v36, 1.0  ;;  %2555 = vmatpush3.xpose.msk.msra.mxu0 %vm1733_vm7, %v1732_v38 }
 0x69c   : > { %2570 = vmatprep.subr.mxu0 %v2903_v0 }
 0x69e   : > { %2557 = vmatmul.mubr.msk.f32.vlgmr.msra.gmra.mxu0 %vm1733_vm7, %v1729_v19 }
 0x69f   : > { %2572 = vmatprep.mubr.msk.f32.mxu0 %vm2904_vm0, %v2903_v0 }
 0x726   : > { %v1901_v39 = vpop.f32.mrf.mxu1 }
 0x727   : > { %v1902_v40 = vadd.f32 %v2333_v27, %v1901_v39 }
 0x728   : > { %v2569_v41 = vpop.f32.mrf.mxu1 }
 0x729   : > { %1906 = vrot.lane.b32.xlu1 %v1902_v40, %s2906_s16 }
 0x75e   : > { %v1806_v42 = vpop.f32.mrf.mxu0 }
 0x75f   : > { %v1810_v45 = vmax.f32 %v1806_v42, 0.0 }
 0x760   : > { %v2558_v43 = vpop.f32.mrf.mxu0 }
 0x761   : > { %2708 = vrsqrt.f32 %v1810_v45  ;;  %vm1813_vm8 = vcmp.eq.f32.partialorder %v1810_v45, inf  ;;  %v1816_v48 = vand.u32 2147483648, %v1810_v45  ;;  %vm1815_vm9 = vcmp.eq.f32.partialorder %v1810_v45, 0.0 }
 0x76e   : > { %v2709_v46 = vpop.eup %2708 }
 0x76f   : > { %v1812_v47 = vmul.f32 %v2709_v46, %v1810_v45 }
 0x771   : > { %v1814_v49 = vsel %vm1813_vm8, %v1810_v45, %v1812_v47 }
 0x772   : > { %v1817_v50 = vsel %vm1815_vm9, %v1816_v48, %v1814_v49 }
 0x773   : > { %v1818_v51 = vsub.f32 0.0, %v1817_v50 }
 0x775   : > { %v1819_v53 = vmul.f32 1.442695, %v1818_v51 }
 0x777   : > { %2710 = vpow2.f32 %v1819_v53 }
 0x784   : > { %v2711_v57 = vpop.eup %2710 }
 0x79b   : > { %v1907_v44 = vpop.permute.xlu1 %1906 }
 0x79c   : > { %2571 = vmatpush3.xpose.msk.msra.mxu0 %vm467_vm1, %v1907_v44 }
 0x79d   : > { %2575 = vmatprep.subr.mxu0 %v2903_v0 }
 0x79f   : > { %2573 = vmatmul.mubr.msk.f32.vlgmr.msra.gmra.mxu0 %vm467_vm1, %v1902_v40 }
 0x7a0   : > { %2577 = vmatprep.mubr.msk.f32.mxu0 %vm2904_vm0, %v2903_v0 }
 0x85f   : > { %v1978_v52 = vpop.f32.mrf.mxu0 }
 0x860   : > { %v1982_v54 = vmul.f32 0.17677669, %v1978_v52 }
 0x861   : > { %v2574_v55 = vpop.f32.mrf.mxu0 }
 0x862   : > { %v1983_v56 = vmul.f32 1.442695, %v1982_v54 }
 0x864   : > { %2712 = vpow2.f32 %v1983_v56 }
 0x871   : > { %v2713_v59 = vpop.eup %2712 }
 0x872   : > { %v1985_v60 = vmul.f32 %v2713_v59, %v2711_v57 }
 0x874   : > { %v1986_v61 = vmul.f32 %v1985_v60, %v3278_v2 }
 0x876   : > { %v1987_v62 = vsel %vm1477_vm12, %v1986_v61, 0.0  ;;  %v1990_v63 = vsel %vm830_vm6, %v1986_v61, -1e+30 }
 0x877   : > { %1988 = vadd.xlane.f32.xlu1 %v1987_v62  ;;  %v1991_v1 = vsel %vm1477_vm12, %v1990_v63, -inf }
 0x878   : > { %1992 = vmax.xlane.f32.xlu0 %v1991_v1 }
 0x900   : > { %v1989_v2 = vpop.xlane.xlu1 %1988 }
 0x901   : > { %v1993_v3 = vpop.xlane.xlu0 %1992  ;;  %vm2002_vm0 = vcmp.gt.f32.partialorder %v1989_v2, 0.0 }
 0x902   : > { %v1994_v4 = vsub.f32 %v1990_v63, %v1993_v3 }
 0x904   : > { %v1995_v5 = vmul.f32 1.442695, %v1994_v4 }
 0x906   : > { %2714 = vpow2.f32 %v1995_v5 }
 0x913   : > { %v2715_v6 = vpop.eup %2714 }
 0x914   : > { %v1997_v7 = vsel %vm1477_vm12, %v2715_v6, 0.0 }
 0x915   : > { %1998 = vadd.xlane.f32.xlu0 %v1997_v7 }
 0x99e   : > { %v1999_v8 = vpop.xlane.xlu0 %1998 }
 0x99f   : > { %2716 = vrcp.f32 %v1999_v8 }
 0x9ac   : > { %v2717_v9 = vpop.eup %2716 }
 0x9ad   : > { %v2001_v10 = vmul.f32 %v2717_v9, %v2715_v6 }
 0x9af   : > { %v2005_v58 = vsel %vm2002_vm0, %v2001_v10, 0.0 }
 0x9b0   : > { %v2006_v11 = vsel %vm1477_vm12, %v2005_v58, 0.0 }
 0x9b1   : > { %2007 = vadd.xlane.f32.xlu0 %v2006_v11 }
 0xa3a   : > { %v2008_v14 = vpop.xlane.xlu0 %2007 }
 0xa3b   : > { %v2009_v15 = vadd.f32 1e-06, %v2008_v14 }
 0xa3d   : > { %2718 = vrsqrt.f32 %v2009_v15 }
 0xa4a   : > { %v2719_v16 = vpop.eup %2718 }
 0xa4b   : > { %v2011_v17 = vmul.f32 %v2719_v16, %v3314_v33 }
 0xa4d   : > { %2576 = vmatpush3.msra.mxu0 %v2011_v17 }
 0xa4e   : > { %2578 = vmatmul.mubr.msk.f32.vlgmr.msra.gmra.mxu0 %vm1477_vm12, %v2005_v58 }
 0xb0e   : > { %v2081_v21 = vpop.f32.mrf.mxu0 }
 0xb0f   : > { %v2085_v22 = vmul.f32 %v2719_v16, %v2081_v21 }
 0xb10   : > { %v2579_v23 = vpop.f32.mrf.mxu0 }
 0xb11   : > { %2589 = vmatmul.mubr.msk.f32.vlgmr.msra.gmra.mxu1 %vm467_vm1, %v2085_v22 }
 0xbd1   : > { %v2159_v24 = vpop.f32.mrf.mxu1 }
 0xbd2   : > { %v2163_v25 = vmax.f32 %v2159_v24, 0.0 }
 0xbd3   : > { %v2590_v26 = vpop.f32.mrf.mxu1 }
 0xbd4   : > { %2164 = vst.msk [vmem:[%s452_s29] sm:$0xff] %vm467_vm1, %v2163_v25 }
 0xbd5 PF: > { %p22_p8 = scmp.ge.s32.totalorder %s3057_s12, 4   ;;  %s3392_s13 = smov %s2886_s14 }
 0xbd6   : > { %s3393_s14 = smov %s2890_s15  ;;  %s3394_s15 = smov %s3068_s21 }
 0xbd7   : > { %s3395_s16 = smov %s3057_s12  ;;  %24 = sbr.rel (!%p22_p8) target bundleno = 5 (0x5), region = 121 }
 0xbdc   :  { %2184 = vsyncpa [#allocation3], 1 }
 0xbdd   :  { %2186 = vsyncpa [#allocation3 + $0x1], 1 }
 0xbde   :  { %2187 = vsyncpa [#allocation5], 1 }
 0xbdf   :  { %2188 = vsyncpa [#allocation8], 1 }

</bundles_post_ra>
